<compile_context>
chip_gen: v7x
topology: tpu7x:2x2x1
jax: 0.10.0
libtpu: 0.0.40
codegen_flags: <defaults>
</compile_context>

<pallas_src>
import jax
import jax.numpy as jnp
from jax import lax
from jax.experimental import pallas as pl
from jax.experimental.pallas import tpu as pltpu

NS_ITERS = 12  # Newton–Schulz iterations for (I + S^T S)^{-1/2} (quadratic convergence)


def _eye(p, dtype=jnp.float32):
    r = lax.broadcasted_iota(jnp.int32, (p, p), 0)
    c = lax.broadcasted_iota(jnp.int32, (p, p), 1)
    return jnp.where(r == c, 1.0, 0.0).astype(dtype)


def _frechet_kernel(w_ref, blocks_ref, out_ref):
    """Single-invocation kernel: unrolled weighted Fréchet-mean over all frames."""
    num_frames = blocks_ref.shape[0]
    p = blocks_ref.shape[2]

    I = _eye(p)
    threeI = 3.0 * I
    # Contract axis 0 of both operands => transposed-LHS matmul, no explicit transpose.
    dn = (((0,), (0,)), ((), ()))

    def step(X, Y, t):
        C = lax.dot_general(Y, X, dn, preferred_element_type=jnp.float32)   # Y^T X  (p,p)
        D = lax.dot_general(X, Y, dn, preferred_element_type=jnp.float32)   # X^T Y  (p,p)
        lift = Y - 0.5 * jnp.dot(X, C + D, preferred_element_type=jnp.float32)
        S = t * lift
        A = I + lax.dot_general(S, S, dn, preferred_element_type=jnp.float32)  # I + S^T S (SPD)

        # Frobenius pre-scaling via a single EUP rsqrt (Yk eigenvalues land in (0, 1]).
        inv_norm = lax.rsqrt(jnp.sum(A * A))          # 1 / ||A||_F
        Yk = A * inv_norm
        Zk = I
        # Fully unrolled coupled Newton–Schulz: Zk -> (A/||A||_F)^{-1/2}
        for _ in range(NS_ITERS):
            T = 0.5 * (threeI - jnp.dot(Zk, Yk, preferred_element_type=jnp.float32))
            Yk = jnp.dot(Yk, T, preferred_element_type=jnp.float32)
            Zk = jnp.dot(T, Zk, preferred_element_type=jnp.float32)

        # A^{-1/2} = Zk / sqrt(||A||_F); fold the scale into (X + S) before the matmul.
        lhs = (X + S) * jnp.sqrt(inv_norm)
        return jnp.dot(lhs, Zk, preferred_element_type=jnp.float32)

    # mean = step(blocks[0], blocks[1], w[0]); then fold frames 2..F-1 (w[1] skipped).
    mean = step(blocks_ref[0], blocks_ref[1], w_ref[0])
    for i in range(2, num_frames):
        mean = step(mean, blocks_ref[i], w_ref[i])

    out_ref[...] = mean


def full_conv1d_forward(blocks, weight, weight_reference):
    """blocks: (F, n, p) f32 stack of Stiefel points; weight: (F,) f32."""
    _, n, p = blocks.shape
    out = pl.pallas_call(
        _frechet_kernel,
        out_shape=jax.ShapeDtypeStruct((n, p), jnp.float32),
        in_specs=[
            pl.BlockSpec(memory_space=pltpu.MemorySpace.SMEM),   # weight (F,) scalars
            pl.BlockSpec(memory_space=pltpu.MemorySpace.VMEM),   # blocks (F, n, p), ~2 KB
        ],
        out_specs=pl.BlockSpec(memory_space=pltpu.MemorySpace.VMEM),
    )(weight, blocks)

    # Trivial scalar glue (parameter-only computation), kept in plain JAX.
    weight_penalty = (weight_reference - jnp.sum(weight)) ** 2
    return out, weight_penalty


# ---------------- pure-JAX reference (eigh-based inverse matrix sqrt) ----------------
def _inv_sqrtm_ref(A):
    w, V = jnp.linalg.eigh(A)
    return (V * (1.0 / jnp.sqrt(w))) @ V.T


def _geodesic_ref(X, Y, t):
    lift = Y - 0.5 * X @ (Y.T @ X + X.T @ Y)
    S = t * lift
    return (X + S) @ _inv_sqrtm_ref(jnp.eye(S.shape[1], dtype=S.dtype) + S.T @ S)


def _forward_ref(blocks, weight):
    mean = _geodesic_ref(blocks[0], blocks[1], weight[0])
    for i in range(2, blocks.shape[0]):
        mean = _geodesic_ref(mean, blocks[i], weight[i])
    return mean


if __name__ == "__main__":
    num_frames, n, p = 4, 16, 8

    key = jax.random.PRNGKey(0)
    raw = jax.random.normal(key, (num_frames, n, p), dtype=jnp.float32)
    # Orthonormalize each frame -> points on the Stiefel manifold (what the module expects).
    blocks = jnp.stack(
        [jnp.linalg.qr(raw[i])[0] for i in range(num_frames)]
    ).astype(jnp.float32)

    # Deterministic parameter init, exactly as in fullConv1d.__init__:
    weight = jnp.array([1.0 / m for m in range(2, num_frames + 2)], dtype=jnp.float32)
    weight_reference = jnp.sum(weight)

    out, penalty = full_conv1d_forward(blocks, weight, weight_reference)
    out = jax.block_until_ready(out)
    penalty = jax.block_until_ready(penalty)

    ref = jax.block_until_ready(_forward_ref(blocks, weight))
    err = float(jnp.max(jnp.abs(out - ref)))
    assert bool(jnp.all(jnp.isfinite(out))), "non-finite output"
    assert err < 1e-2, f"mismatch vs reference: max abs err = {err}"
    assert float(penalty) < 1e-6, "weight penalty should be ~0 at init"

    print("KERNEL_OK")
</pallas_src>

<mosaic_0001>
module attributes {stable_mosaic.version = 11 : i64} {
  func.func @_frechet_kernel(%arg0: memref<4xf32, #tpu.memory_space<smem>>, %arg1: memref<4x16x8xf32, #tpu.memory_space<vmem>>, %arg2: memref<16x8xf32, #tpu.memory_space<vmem>>) attributes {dimension_semantics = [], scalar_prefetch = 0 : i64, scratch_operands = 0 : i64, tpu.core_type = #tpu.core_type<tc>} {
    %0 = tpu.iota {dimensions = array<i32: 0>} : vector<8x8xi32>
    %1 = tpu.iota {dimensions = array<i32: 1>} : vector<8x8xi32>
    %2 = arith.cmpi eq, %0, %1 : vector<8x8xi32>
    %cst = arith.constant 1.000000e+00 : f32
    %cst_0 = arith.constant 0.000000e+00 : f32
    %3 = vector.broadcast %cst : f32 to vector<8x8xf32>
    %4 = vector.broadcast %cst_0 : f32 to vector<8x8xf32>
    %5 = arith.select %2, %3, %4 : vector<8x8xi1>, vector<8x8xf32>
    %cst_1 = arith.constant 3.000000e+00 : f32
    %6 = vector.broadcast %cst_1 : f32 to vector<8x8xf32>
    %7 = arith.mulf %6, %5 : vector<8x8xf32>
    %c0 = arith.constant 0 : index
    %c0_2 = arith.constant 0 : index
    %c0_3 = arith.constant 0 : index
    %8 = vector.load %arg1[%c0, %c0_2, %c0_3] : memref<4x16x8xf32, #tpu.memory_space<vmem>>, vector<1x16x8xf32>
    %9 = vector.shape_cast %8 : vector<1x16x8xf32> to vector<16x8xf32>
    %c1 = arith.constant 1 : index
    %c0_4 = arith.constant 0 : index
    %c0_5 = arith.constant 0 : index
    %10 = vector.load %arg1[%c1, %c0_4, %c0_5] : memref<4x16x8xf32, #tpu.memory_space<vmem>>, vector<1x16x8xf32>
    %11 = vector.shape_cast %10 : vector<1x16x8xf32> to vector<16x8xf32>
    %c0_6 = arith.constant 0 : index
    %12 = memref.load %arg0[%c0_6] : memref<4xf32, #tpu.memory_space<smem>>
    %cst_7 = arith.constant dense<0.000000e+00> : vector<8x8xf32>
    %13 = tpu.matmul %11, %9, %cst_7 {dimension_numbers = #tpu.dot_dimension_numbers<[0], [0], [1], [1], [0, 1, 1, 1], [], []>} : vector<16x8xf32>, vector<16x8xf32>, vector<8x8xf32> -> vector<8x8xf32>
    %cst_8 = arith.constant dense<0.000000e+00> : vector<8x8xf32>
    %14 = tpu.matmul %9, %11, %cst_8 {dimension_numbers = #tpu.dot_dimension_numbers<[0], [0], [1], [1], [0, 1, 1, 1], [], []>} : vector<16x8xf32>, vector<16x8xf32>, vector<8x8xf32> -> vector<8x8xf32>
    %15 = arith.addf %13, %14 : vector<8x8xf32>
    %cst_9 = arith.constant dense<0.000000e+00> : vector<16x8xf32>
    %16 = tpu.matmul %9, %15, %cst_9 {dimension_numbers = #tpu.dot_dimension_numbers<[1], [0], [0], [1], [0, 0, 1, 1], [], []>} : vector<16x8xf32>, vector<8x8xf32>, vector<16x8xf32> -> vector<16x8xf32>
    %cst_10 = arith.constant 5.000000e-01 : f32
    %17 = vector.broadcast %cst_10 : f32 to vector<16x8xf32>
    %18 = arith.mulf %17, %16 : vector<16x8xf32>
    %19 = arith.subf %11, %18 : vector<16x8xf32>
    %20 = vector.broadcast %12 : f32 to vector<16x8xf32>
    %21 = arith.mulf %20, %19 : vector<16x8xf32>
    %cst_11 = arith.constant dense<0.000000e+00> : vector<8x8xf32>
    %22 = tpu.matmul %21, %21, %cst_11 {dimension_numbers = #tpu.dot_dimension_numbers<[0], [0], [1], [1], [0, 1, 1, 1], [], []>} : vector<16x8xf32>, vector<16x8xf32>, vector<8x8xf32> -> vector<8x8xf32>
    %23 = arith.addf %5, %22 : vector<8x8xf32>
    %24 = arith.mulf %23, %23 : vector<8x8xf32>
    %25 = vector.shape_cast %24 : vector<8x8xf32> to vector<1x8x8xf32>
    %cst_12 = arith.constant dense<0.000000e+00> : vector<1xf32>
    %26 = vector.multi_reduction <add>, %25, %cst_12 [1, 2] : vector<1x8x8xf32> to vector<1xf32>
    %27 = vector.shape_cast %26 : vector<1xf32> to vector<1x1x1xf32>
    %28 = vector.extract %27[0, 0, 0] : f32 from vector<1x1x1xf32>
    %29 = math.rsqrt %28 : f32
    %30 = vector.broadcast %29 : f32 to vector<8x8xf32>
    %31 = arith.mulf %23, %30 : vector<8x8xf32>
    %cst_13 = arith.constant dense<0.000000e+00> : vector<8x8xf32>
    %32 = tpu.matmul %5, %31, %cst_13 {dimension_numbers = #tpu.dot_dimension_numbers<[1], [0], [0], [1], [0, 0, 1, 1], [], []>} : vector<8x8xf32>, vector<8x8xf32>, vector<8x8xf32> -> vector<8x8xf32>
    %33 = arith.subf %7, %32 : vector<8x8xf32>
    %cst_14 = arith.constant 5.000000e-01 : f32
    %34 = vector.broadcast %cst_14 : f32 to vector<8x8xf32>
    %35 = arith.mulf %34, %33 : vector<8x8xf32>
    %cst_15 = arith.constant dense<0.000000e+00> : vector<8x8xf32>
    %36 = tpu.matmul %31, %35, %cst_15 {dimension_numbers = #tpu.dot_dimension_numbers<[1], [0], [0], [1], [0, 0, 1, 1], [], []>} : vector<8x8xf32>, vector<8x8xf32>, vector<8x8xf32> -> vector<8x8xf32>
    %cst_16 = arith.constant dense<0.000000e+00> : vector<8x8xf32>
    %37 = tpu.matmul %35, %5, %cst_16 {dimension_numbers = #tpu.dot_dimension_numbers<[1], [0], [0], [1], [0, 0, 1, 1], [], []>} : vector<8x8xf32>, vector<8x8xf32>, vector<8x8xf32> -> vector<8x8xf32>
    %cst_17 = arith.constant dense<0.000000e+00> : vector<8x8xf32>
    %38 = tpu.matmul %37, %36, %cst_17 {dimension_numbers = #tpu.dot_dimension_numbers<[1], [0], [0], [1], [0, 0, 1, 1], [], []>} : vector<8x8xf32>, vector<8x8xf32>, vector<8x8xf32> -> vector<8x8xf32>
    %39 = arith.subf %7, %38 : vector<8x8xf32>
    %cst_18 = arith.constant 5.000000e-01 : f32
    %40 = vector.broadcast %cst_18 : f32 to vector<8x8xf32>
    %41 = arith.mulf %40, %39 : vector<8x8xf32>
    %cst_19 = arith.constant dense<0.000000e+00> : vector<8x8xf32>
    %42 = tpu.matmul %36, %41, %cst_19 {dimension_numbers = #tpu.dot_dimension_numbers<[1], [0], [0], [1], [0, 0, 1, 1], [], []>} : vector<8x8xf32>, vector<8x8xf32>, vector<8x8xf32> -> vector<8x8xf32>
    %cst_20 = arith.constant dense<0.000000e+00> : vector<8x8xf32>
    %43 = tpu.matmul %41, %37, %cst_20 {dimension_numbers = #tpu.dot_dimension_numbers<[1], [0], [0], [1], [0, 0, 1, 1], [], []>} : vector<8x8xf32>, vector<8x8xf32>, vector<8x8xf32> -> vector<8x8xf32>
    %cst_21 = arith.constant dense<0.000000e+00> : vector<8x8xf32>
    %44 = tpu.matmul %43, %42, %cst_21 {dimension_numbers = #tpu.dot_dimension_numbers<[1], [0], [0], [1], [0, 0, 1, 1], [], []>} : vector<8x8xf32>, vector<8x8xf32>, vector<8x8xf32> -> vector<8x8xf32>
    %45 = arith.subf %7, %44 : vector<8x8xf32>
    %cst_22 = arith.constant 5.000000e-01 : f32
    %46 = vector.broadcast %cst_22 : f32 to vector<8x8xf32>
    %47 = arith.mulf %46, %45 : vector<8x8xf32>
    %cst_23 = arith.constant dense<0.000000e+00> : vector<8x8xf32>
    %48 = tpu.matmul %42, %47, %cst_23 {dimension_numbers = #tpu.dot_dimension_numbers<[1], [0], [0], [1], [0, 0, 1, 1], [], []>} : vector<8x8xf32>, vector<8x8xf32>, vector<8x8xf32> -> vector<8x8xf32>
    %cst_24 = arith.constant dense<0.000000e+00> : vector<8x8xf32>
    %49 = tpu.matmul %47, %43, %cst_24 {dimension_numbers = #tpu.dot_dimension_numbers<[1], [0], [0], [1], [0, 0, 1, 1], [], []>} : vector<8x8xf32>, vector<8x8xf32>, vector<8x8xf32> -> vector<8x8xf32>
    %cst_25 = arith.constant dense<0.000000e+00> : vector<8x8xf32>
    %50 = tpu.matmul %49, %48, %cst_25 {dimension_numbers = #tpu.dot_dimension_numbers<[1], [0], [0], [1], [0, 0, 1, 1], [], []>} : vector<8x8xf32>, vector<8x8xf32>, vector<8x8xf32> -> vector<8x8xf32>
    %51 = arith.subf %7, %50 : vector<8x8xf32>
    %cst_26 = arith.constant 5.000000e-01 : f32
    %52 = vector.broadcast %cst_26 : f32 to vector<8x8xf32>
    %53 = arith.mulf %52, %51 : vector<8x8xf32>
    %cst_27 = arith.constant dense<0.000000e+00> : vector<8x8xf32>
    %54 = tpu.matmul %48, %53, %cst_27 {dimension_numbers = #tpu.dot_dimension_numbers<[1], [0], [0], [1], [0, 0, 1, 1], [], []>} : vector<8x8xf32>, vector<8x8xf32>, vector<8x8xf32> -> vector<8x8xf32>
    %cst_28 = arith.constant dense<0.000000e+00> : vector<8x8xf32>
    %55 = tpu.matmul %53, %49, %cst_28 {dimension_numbers = #tpu.dot_dimension_numbers<[1], [0], [0], [1], [0, 0, 1, 1], [], []>} : vector<8x8xf32>, vector<8x8xf32>, vector<8x8xf32> -> vector<8x8xf32>
    %cst_29 = arith.constant dense<0.000000e+00> : vector<8x8xf32>
    %56 = tpu.matmul %55, %54, %cst_29 {dimension_numbers = #tpu.dot_dimension_numbers<[1], [0], [0], [1], [0, 0, 1, 1], [], []>} : vector<8x8xf32>, vector<8x8xf32>, vector<8x8xf32> -> vector<8x8xf32>
    %57 = arith.subf %7, %56 : vector<8x8xf32>
    %cst_30 = arith.constant 5.000000e-01 : f32
    %58 = vector.broadcast %cst_30 : f32 to vector<8x8xf32>
    %59 = arith.mulf %58, %57 : vector<8x8xf32>
    %cst_31 = arith.constant dense<0.000000e+00> : vector<8x8xf32>
    %60 = tpu.matmul %54, %59, %cst_31 {dimension_numbers = #tpu.dot_dimension_numbers<[1], [0], [0], [1], [0, 0, 1, 1], [], []>} : vector<8x8xf32>, vector<8x8xf32>, vector<8x8xf32> -> vector<8x8xf32>
    %cst_32 = arith.constant dense<0.000000e+00> : vector<8x8xf32>
    %61 = tpu.matmul %59, %55, %cst_32 {dimension_numbers = #tpu.dot_dimension_numbers<[1], [0], [0], [1], [0, 0, 1, 1], [], []>} : vector<8x8xf32>, vector<8x8xf32>, vector<8x8xf32> -> vector<8x8xf32>
    %cst_33 = arith.constant dense<0.000000e+00> : vector<8x8xf32>
    %62 = tpu.matmul %61, %60, %cst_33 {dimension_numbers = #tpu.dot_dimension_numbers<[1], [0], [0], [1], [0, 0, 1, 1], [], []>} : vector<8x8xf32>, vector<8x8xf32>, vector<8x8xf32> -> vector<8x8xf32>
    %63 = arith.subf %7, %62 : vector<8x8xf32>
    %cst_34 = arith.constant 5.000000e-01 : f32
    %64 = vector.broadcast %cst_34 : f32 to vector<8x8xf32>
    %65 = arith.mulf %64, %63 : vector<8x8xf32>
    %cst_35 = arith.constant dense<0.000000e+00> : vector<8x8xf32>
    %66 = tpu.matmul %60, %65, %cst_35 {dimension_numbers = #tpu.dot_dimension_numbers<[1], [0], [0], [1], [0, 0, 1, 1], [], []>} : vector<8x8xf32>, vector<8x8xf32>, vector<8x8xf32> -> vector<8x8xf32>
    %cst_36 = arith.constant dense<0.000000e+00> : vector<8x8xf32>
    %67 = tpu.matmul %65, %61, %cst_36 {dimension_numbers = #tpu.dot_dimension_numbers<[1], [0], [0], [1], [0, 0, 1, 1], [], []>} : vector<8x8xf32>, vector<8x8xf32>, vector<8x8xf32> -> vector<8x8xf32>
    %cst_37 = arith.constant dense<0.000000e+00> : vector<8x8xf32>
    %68 = tpu.matmul %67, %66, %cst_37 {dimension_numbers = #tpu.dot_dimension_numbers<[1], [0], [0], [1], [0, 0, 1, 1], [], []>} : vector<8x8xf32>, vector<8x8xf32>, vector<8x8xf32> -> vector<8x8xf32>
    %69 = arith.subf %7, %68 : vector<8x8xf32>
    %cst_38 = arith.constant 5.000000e-01 : f32
    %70 = vector.broadcast %cst_38 : f32 to vector<8x8xf32>
    %71 = arith.mulf %70, %69 : vector<8x8xf32>
    %cst_39 = arith.constant dense<0.000000e+00> : vector<8x8xf32>
    %72 = tpu.matmul %66, %71, %cst_39 {dimension_numbers = #tpu.dot_dimension_numbers<[1], [0], [0], [1], [0, 0, 1, 1], [], []>} : vector<8x8xf32>, vector<8x8xf32>, vector<8x8xf32> -> vector<8x8xf32>
    %cst_40 = arith.constant dense<0.000000e+00> : vector<8x8xf32>
    %73 = tpu.matmul %71, %67, %cst_40 {dimension_numbers = #tpu.dot_dimension_numbers<[1], [0], [0], [1], [0, 0, 1, 1], [], []>} : vector<8x8xf32>, vector<8x8xf32>, vector<8x8xf32> -> vector<8x8xf32>
    %cst_41 = arith.constant dense<0.000000e+00> : vector<8x8xf32>
    %74 = tpu.matmul %73, %72, %cst_41 {dimension_numbers = #tpu.dot_dimension_numbers<[1], [0], [0], [1], [0, 0, 1, 1], [], []>} : vector<8x8xf32>, vector<8x8xf32>, vector<8x8xf32> -> vector<8x8xf32>
    %75 = arith.subf %7, %74 : vector<8x8xf32>
    %cst_42 = arith.constant 5.000000e-01 : f32
    %76 = vector.broadcast %cst_42 : f32 to vector<8x8xf32>
    %77 = arith.mulf %76, %75 : vector<8x8xf32>
    %cst_43 = arith.constant dense<0.000000e+00> : vector<8x8xf32>
    %78 = tpu.matmul %72, %77, %cst_43 {dimension_numbers = #tpu.dot_dimension_numbers<[1], [0], [0], [1], [0, 0, 1, 1], [], []>} : vector<8x8xf32>, vector<8x8xf32>, vector<8x8xf32> -> vector<8x8xf32>
    %cst_44 = arith.constant dense<0.000000e+00> : vector<8x8xf32>
    %79 = tpu.matmul %77, %73, %cst_44 {dimension_numbers = #tpu.dot_dimension_numbers<[1], [0], [0], [1], [0, 0, 1, 1], [], []>} : vector<8x8xf32>, vector<8x8xf32>, vector<8x8xf32> -> vector<8x8xf32>
    %cst_45 = arith.constant dense<0.000000e+00> : vector<8x8xf32>
    %80 = tpu.matmul %79, %78, %cst_45 {dimension_numbers = #tpu.dot_dimension_numbers<[1], [0], [0], [1], [0, 0, 1, 1], [], []>} : vector<8x8xf32>, vector<8x8xf32>, vector<8x8xf32> -> vector<8x8xf32>
    %81 = arith.subf %7, %80 : vector<8x8xf32>
    %cst_46 = arith.constant 5.000000e-01 : f32
    %82 = vector.broadcast %cst_46 : f32 to vector<8x8xf32>
    %83 = arith.mulf %82, %81 : vector<8x8xf32>
    %cst_47 = arith.constant dense<0.000000e+00> : vector<8x8xf32>
    %84 = tpu.matmul %78, %83, %cst_47 {dimension_numbers = #tpu.dot_dimension_numbers<[1], [0], [0], [1], [0, 0, 1, 1], [], []>} : vector<8x8xf32>, vector<8x8xf32>, vector<8x8xf32> -> vector<8x8xf32>
    %cst_48 = arith.constant dense<0.000000e+00> : vector<8x8xf32>
    %85 = tpu.matmul %83, %79, %cst_48 {dimension_numbers = #tpu.dot_dimension_numbers<[1], [0], [0], [1], [0, 0, 1, 1], [], []>} : vector<8x8xf32>, vector<8x8xf32>, vector<8x8xf32> -> vector<8x8xf32>
    %cst_49 = arith.constant dense<0.000000e+00> : vector<8x8xf32>
    %86 = tpu.matmul %85, %84, %cst_49 {dimension_numbers = #tpu.dot_dimension_numbers<[1], [0], [0], [1], [0, 0, 1, 1], [], []>} : vector<8x8xf32>, vector<8x8xf32>, vector<8x8xf32> -> vector<8x8xf32>
    %87 = arith.subf %7, %86 : vector<8x8xf32>
    %cst_50 = arith.constant 5.000000e-01 : f32
    %88 = vector.broadcast %cst_50 : f32 to vector<8x8xf32>
    %89 = arith.mulf %88, %87 : vector<8x8xf32>
    %cst_51 = arith.constant dense<0.000000e+00> : vector<8x8xf32>
    %90 = tpu.matmul %84, %89, %cst_51 {dimension_numbers = #tpu.dot_dimension_numbers<[1], [0], [0], [1], [0, 0, 1, 1], [], []>} : vector<8x8xf32>, vector<8x8xf32>, vector<8x8xf32> -> vector<8x8xf32>
    %cst_52 = arith.constant dense<0.000000e+00> : vector<8x8xf32>
    %91 = tpu.matmul %89, %85, %cst_52 {dimension_numbers = #tpu.dot_dimension_numbers<[1], [0], [0], [1], [0, 0, 1, 1], [], []>} : vector<8x8xf32>, vector<8x8xf32>, vector<8x8xf32> -> vector<8x8xf32>
    %cst_53 = arith.constant dense<0.000000e+00> : vector<8x8xf32>
    %92 = tpu.matmul %91, %90, %cst_53 {dimension_numbers = #tpu.dot_dimension_numbers<[1], [0], [0], [1], [0, 0, 1, 1], [], []>} : vector<8x8xf32>, vector<8x8xf32>, vector<8x8xf32> -> vector<8x8xf32>
    %93 = arith.subf %7, %92 : vector<8x8xf32>
    %cst_54 = arith.constant 5.000000e-01 : f32
    %94 = vector.broadcast %cst_54 : f32 to vector<8x8xf32>
    %95 = arith.mulf %94, %93 : vector<8x8xf32>
    %cst_55 = arith.constant dense<0.000000e+00> : vector<8x8xf32>
    %96 = tpu.matmul %90, %95, %cst_55 {dimension_numbers = #tpu.dot_dimension_numbers<[1], [0], [0], [1], [0, 0, 1, 1], [], []>} : vector<8x8xf32>, vector<8x8xf32>, vector<8x8xf32> -> vector<8x8xf32>
    %cst_56 = arith.constant dense<0.000000e+00> : vector<8x8xf32>
    %97 = tpu.matmul %95, %91, %cst_56 {dimension_numbers = #tpu.dot_dimension_numbers<[1], [0], [0], [1], [0, 0, 1, 1], [], []>} : vector<8x8xf32>, vector<8x8xf32>, vector<8x8xf32> -> vector<8x8xf32>
    %cst_57 = arith.constant dense<0.000000e+00> : vector<8x8xf32>
    %98 = tpu.matmul %97, %96, %cst_57 {dimension_numbers = #tpu.dot_dimension_numbers<[1], [0], [0], [1], [0, 0, 1, 1], [], []>} : vector<8x8xf32>, vector<8x8xf32>, vector<8x8xf32> -> vector<8x8xf32>
    %99 = arith.subf %7, %98 : vector<8x8xf32>
    %cst_58 = arith.constant 5.000000e-01 : f32
    %100 = vector.broadcast %cst_58 : f32 to vector<8x8xf32>
    %101 = arith.mulf %100, %99 : vector<8x8xf32>
    %cst_59 = arith.constant dense<0.000000e+00> : vector<8x8xf32>
    %102 = tpu.matmul %101, %97, %cst_59 {dimension_numbers = #tpu.dot_dimension_numbers<[1], [0], [0], [1], [0, 0, 1, 1], [], []>} : vector<8x8xf32>, vector<8x8xf32>, vector<8x8xf32> -> vector<8x8xf32>
    %103 = arith.addf %9, %21 : vector<16x8xf32>
    %104 = math.sqrt %29 : f32
    %105 = vector.broadcast %104 : f32 to vector<16x8xf32>
    %106 = arith.mulf %103, %105 : vector<16x8xf32>
    %cst_60 = arith.constant dense<0.000000e+00> : vector<16x8xf32>
    %107 = tpu.matmul %106, %102, %cst_60 {dimension_numbers = #tpu.dot_dimension_numbers<[1], [0], [0], [1], [0, 0, 1, 1], [], []>} : vector<16x8xf32>, vector<8x8xf32>, vector<16x8xf32> -> vector<16x8xf32>
    %c2 = arith.constant 2 : index
    %c0_61 = arith.constant 0 : index
    %c0_62 = arith.constant 0 : index
    %108 = vector.load %arg1[%c2, %c0_61, %c0_62] : memref<4x16x8xf32, #tpu.memory_space<vmem>>, vector<1x16x8xf32>
    %109 = vector.shape_cast %108 : vector<1x16x8xf32> to vector<16x8xf32>
    %c2_63 = arith.constant 2 : index
    %110 = memref.load %arg0[%c2_63] : memref<4xf32, #tpu.memory_space<smem>>
    %cst_64 = arith.constant dense<0.000000e+00> : vector<8x8xf32>
    %111 = tpu.matmul %109, %107, %cst_64 {dimension_numbers = #tpu.dot_dimension_numbers<[0], [0], [1], [1], [0, 1, 1, 1], [], []>} : vector<16x8xf32>, vector<16x8xf32>, vector<8x8xf32> -> vector<8x8xf32>
    %cst_65 = arith.constant dense<0.000000e+00> : vector<8x8xf32>
    %112 = tpu.matmul %107, %109, %cst_65 {dimension_numbers = #tpu.dot_dimension_numbers<[0], [0], [1], [1], [0, 1, 1, 1], [], []>} : vector<16x8xf32>, vector<16x8xf32>, vector<8x8xf32> -> vector<8x8xf32>
    %113 = arith.addf %111, %112 : vector<8x8xf32>
    %cst_66 = arith.constant dense<0.000000e+00> : vector<16x8xf32>
    %114 = tpu.matmul %107, %113, %cst_66 {dimension_numbers = #tpu.dot_dimension_numbers<[1], [0], [0], [1], [0, 0, 1, 1], [], []>} : vector<16x8xf32>, vector<8x8xf32>, vector<16x8xf32> -> vector<16x8xf32>
    %cst_67 = arith.constant 5.000000e-01 : f32
    %115 = vector.broadcast %cst_67 : f32 to vector<16x8xf32>
    %116 = arith.mulf %115, %114 : vector<16x8xf32>
    %117 = arith.subf %109, %116 : vector<16x8xf32>
    %118 = vector.broadcast %110 : f32 to vector<16x8xf32>
    %119 = arith.mulf %118, %117 : vector<16x8xf32>
    %cst_68 = arith.constant dense<0.000000e+00> : vector<8x8xf32>
    %120 = tpu.matmul %119, %119, %cst_68 {dimension_numbers = #tpu.dot_dimension_numbers<[0], [0], [1], [1], [0, 1, 1, 1], [], []>} : vector<16x8xf32>, vector<16x8xf32>, vector<8x8xf32> -> vector<8x8xf32>
    %121 = arith.addf %5, %120 : vector<8x8xf32>
    %122 = arith.mulf %121, %121 : vector<8x8xf32>
    %123 = vector.shape_cast %122 : vector<8x8xf32> to vector<1x8x8xf32>
    %cst_69 = arith.constant dense<0.000000e+00> : vector<1xf32>
    %124 = vector.multi_reduction <add>, %123, %cst_69 [1, 2] : vector<1x8x8xf32> to vector<1xf32>
    %125 = vector.shape_cast %124 : vector<1xf32> to vector<1x1x1xf32>
    %126 = vector.extract %125[0, 0, 0] : f32 from vector<1x1x1xf32>
    %127 = math.rsqrt %126 : f32
    %128 = vector.broadcast %127 : f32 to vector<8x8xf32>
    %129 = arith.mulf %121, %128 : vector<8x8xf32>
    %cst_70 = arith.constant dense<0.000000e+00> : vector<8x8xf32>
    %130 = tpu.matmul %5, %129, %cst_70 {dimension_numbers = #tpu.dot_dimension_numbers<[1], [0], [0], [1], [0, 0, 1, 1], [], []>} : vector<8x8xf32>, vector<8x8xf32>, vector<8x8xf32> -> vector<8x8xf32>
    %131 = arith.subf %7, %130 : vector<8x8xf32>
    %cst_71 = arith.constant 5.000000e-01 : f32
    %132 = vector.broadcast %cst_71 : f32 to vector<8x8xf32>
    %133 = arith.mulf %132, %131 : vector<8x8xf32>
    %cst_72 = arith.constant dense<0.000000e+00> : vector<8x8xf32>
    %134 = tpu.matmul %129, %133, %cst_72 {dimension_numbers = #tpu.dot_dimension_numbers<[1], [0], [0], [1], [0, 0, 1, 1], [], []>} : vector<8x8xf32>, vector<8x8xf32>, vector<8x8xf32> -> vector<8x8xf32>
    %cst_73 = arith.constant dense<0.000000e+00> : vector<8x8xf32>
    %135 = tpu.matmul %133, %5, %cst_73 {dimension_numbers = #tpu.dot_dimension_numbers<[1], [0], [0], [1], [0, 0, 1, 1], [], []>} : vector<8x8xf32>, vector<8x8xf32>, vector<8x8xf32> -> vector<8x8xf32>
    %cst_74 = arith.constant dense<0.000000e+00> : vector<8x8xf32>
    %136 = tpu.matmul %135, %134, %cst_74 {dimension_numbers = #tpu.dot_dimension_numbers<[1], [0], [0], [1], [0, 0, 1, 1], [], []>} : vector<8x8xf32>, vector<8x8xf32>, vector<8x8xf32> -> vector<8x8xf32>
    %137 = arith.subf %7, %136 : vector<8x8xf32>
    %cst_75 = arith.constant 5.000000e-01 : f32
    %138 = vector.broadcast %cst_75 : f32 to vector<8x8xf32>
    %139 = arith.mulf %138, %137 : vector<8x8xf32>
    %cst_76 = arith.constant dense<0.000000e+00> : vector<8x8xf32>
    %140 = tpu.matmul %134, %139, %cst_76 {dimension_numbers = #tpu.dot_dimension_numbers<[1], [0], [0], [1], [0, 0, 1, 1], [], []>} : vector<8x8xf32>, vector<8x8xf32>, vector<8x8xf32> -> vector<8x8xf32>
    %cst_77 = arith.constant dense<0.000000e+00> : vector<8x8xf32>
    %141 = tpu.matmul %139, %135, %cst_77 {dimension_numbers = #tpu.dot_dimension_numbers<[1], [0], [0], [1], [0, 0, 1, 1], [], []>} : vector<8x8xf32>, vector<8x8xf32>, vector<8x8xf32> -> vector<8x8xf32>
    %cst_78 = arith.constant dense<0.000000e+00> : vector<8x8xf32>
    %142 = tpu.matmul %141, %140, %cst_78 {dimension_numbers = #tpu.dot_dimension_numbers<[1], [0], [0], [1], [0, 0, 1, 1], [], []>} : vector<8x8xf32>, vector<8x8xf32>, vector<8x8xf32> -> vector<8x8xf32>
    %143 = arith.subf %7, %142 : vector<8x8xf32>
    %cst_79 = arith.constant 5.000000e-01 : f32
    %144 = vector.broadcast %cst_79 : f32 to vector<8x8xf32>
    %145 = arith.mulf %144, %143 : vector<8x8xf32>
    %cst_80 = arith.constant dense<0.000000e+00> : vector<8x8xf32>
    %146 = tpu.matmul %140, %145, %cst_80 {dimension_numbers = #tpu.dot_dimension_numbers<[1], [0], [0], [1], [0, 0, 1, 1], [], []>} : vector<8x8xf32>, vector<8x8xf32>, vector<8x8xf32> -> vector<8x8xf32>
    %cst_81 = arith.constant dense<0.000000e+00> : vector<8x8xf32>
    %147 = tpu.matmul %145, %141, %cst_81 {dimension_numbers = #tpu.dot_dimension_numbers<[1], [0], [0], [1], [0, 0, 1, 1], [], []>} : vector<8x8xf32>, vector<8x8xf32>, vector<8x8xf32> -> vector<8x8xf32>
    %cst_82 = arith.constant dense<0.000000e+00> : vector<8x8xf32>
    %148 = tpu.matmul %147, %146, %cst_82 {dimension_numbers = #tpu.dot_dimension_numbers<[1], [0], [0], [1], [0, 0, 1, 1], [], []>} : vector<8x8xf32>, vector<8x8xf32>, vector<8x8xf32> -> vector<8x8xf32>
    %149 = arith.subf %7, %148 : vector<8x8xf32>
    %cst_83 = arith.constant 5.000000e-01 : f32
    %150 = vector.broadcast %cst_83 : f32 to vector<8x8xf32>
    %151 = arith.mulf %150, %149 : vector<8x8xf32>
    %cst_84 = arith.constant dense<0.000000e+00> : vector<8x8xf32>
    %152 = tpu.matmul %146, %151, %cst_84 {dimension_numbers = #tpu.dot_dimension_numbers<[1], [0], [0], [1], [0, 0, 1, 1], [], []>} : vector<8x8xf32>, vector<8x8xf32>, vector<8x8xf32> -> vector<8x8xf32>
    %cst_85 = arith.constant dense<0.000000e+00> : vector<8x8xf32>
    %153 = tpu.matmul %151, %147, %cst_85 {dimension_numbers = #tpu.dot_dimension_numbers<[1], [0], [0], [1], [0, 0, 1, 1], [], []>} : vector<8x8xf32>, vector<8x8xf32>, vector<8x8xf32> -> vector<8x8xf32>
    %cst_86 = arith.constant dense<0.000000e+00> : vector<8x8xf32>
    %154 = tpu.matmul %153, %152, %cst_86 {dimension_numbers = #tpu.dot_dimension_numbers<[1], [0], [0], [1], [0, 0, 1, 1], [], []>} : vector<8x8xf32>, vector<8x8xf32>, vector<8x8xf32> -> vector<8x8xf32>
    %155 = arith.subf %7, %154 : vector<8x8xf32>
    %cst_87 = arith.constant 5.000000e-01 : f32
    %156 = vector.broadcast %cst_87 : f32 to vector<8x8xf32>
    %157 = arith.mulf %156, %155 : vector<8x8xf32>
    %cst_88 = arith.constant dense<0.000000e+00> : vector<8x8xf32>
    %158 = tpu.matmul %152, %157, %cst_88 {dimension_numbers = #tpu.dot_dimension_numbers<[1], [0], [0], [1], [0, 0, 1, 1], [], []>} : vector<8x8xf32>, vector<8x8xf32>, vector<8x8xf32> -> vector<8x8xf32>
    %cst_89 = arith.constant dense<0.000000e+00> : vector<8x8xf32>
    %159 = tpu.matmul %157, %153, %cst_89 {dimension_numbers = #tpu.dot_dimension_numbers<[1], [0], [0], [1], [0, 0, 1, 1], [], []>} : vector<8x8xf32>, vector<8x8xf32>, vector<8x8xf32> -> vector<8x8xf32>
    %cst_90 = arith.constant dense<0.000000e+00> : vector<8x8xf32>
    %160 = tpu.matmul %159, %158, %cst_90 {dimension_numbers = #tpu.dot_dimension_numbers<[1], [0], [0], [1], [0, 0, 1, 1], [], []>} : vector<8x8xf32>, vector<8x8xf32>, vector<8x8xf32> -> vector<8x8xf32>
    %161 = arith.subf %7, %160 : vector<8x8xf32>
    %cst_91 = arith.constant 5.000000e-01 : f32
    %162 = vector.broadcast %cst_91 : f32 to vector<8x8xf32>
    %163 = arith.mulf %162, %161 : vector<8x8xf32>
    %cst_92 = arith.constant dense<0.000000e+00> : vector<8x8xf32>
    %164 = tpu.matmul %158, %163, %cst_92 {dimension_numbers = #tpu.dot_dimension_numbers<[1], [0], [0], [1], [0, 0, 1, 1], [], []>} : vector<8x8xf32>, vector<8x8xf32>, vector<8x8xf32> -> vector<8x8xf32>
    %cst_93 = arith.constant dense<0.000000e+00> : vector<8x8xf32>
    %165 = tpu.matmul %163, %159, %cst_93 {dimension_numbers = #tpu.dot_dimension_numbers<[1], [0], [0], [1], [0, 0, 1, 1], [], []>} : vector<8x8xf32>, vector<8x8xf32>, vector<8x8xf32> -> vector<8x8xf32>
    %cst_94 = arith.constant dense<0.000000e+00> : vector<8x8xf32>
    %166 = tpu.matmul %165, %164, %cst_94 {dimension_numbers = #tpu.dot_dimension_numbers<[1], [0], [0], [1], [0, 0, 1, 1], [], []>} : vector<8x8xf32>, vector<8x8xf32>, vector<8x8xf32> -> vector<8x8xf32>
    %167 = arith.subf %7, %166 : vector<8x8xf32>
    %cst_95 = arith.constant 5.000000e-01 : f32
    %168 = vector.broadcast %cst_95 : f32 to vector<8x8xf32>
    %169 = arith.mulf %168, %167 : vector<8x8xf32>
    %cst_96 = arith.constant dense<0.000000e+00> : vector<8x8xf32>
    %170 = tpu.matmul %164, %169, %cst_96 {dimension_numbers = #tpu.dot_dimension_numbers<[1], [0], [0], [1], [0, 0, 1, 1], [], []>} : vector<8x8xf32>, vector<8x8xf32>, vector<8x8xf32> -> vector<8x8xf32>
    %cst_97 = arith.constant dense<0.000000e+00> : vector<8x8xf32>
    %171 = tpu.matmul %169, %165, %cst_97 {dimension_numbers = #tpu.dot_dimension_numbers<[1], [0], [0], [1], [0, 0, 1, 1], [], []>} : vector<8x8xf32>, vector<8x8xf32>, vector<8x8xf32> -> vector<8x8xf32>
    %cst_98 = arith.constant dense<0.000000e+00> : vector<8x8xf32>
    %172 = tpu.matmul %171, %170, %cst_98 {dimension_numbers = #tpu.dot_dimension_numbers<[1], [0], [0], [1], [0, 0, 1, 1], [], []>} : vector<8x8xf32>, vector<8x8xf32>, vector<8x8xf32> -> vector<8x8xf32>
    %173 = arith.subf %7, %172 : vector<8x8xf32>
    %cst_99 = arith.constant 5.000000e-01 : f32
    %174 = vector.broadcast %cst_99 : f32 to vector<8x8xf32>
    %175 = arith.mulf %174, %173 : vector<8x8xf32>
    %cst_100 = arith.constant dense<0.000000e+00> : vector<8x8xf32>
    %176 = tpu.matmul %170, %175, %cst_100 {dimension_numbers = #tpu.dot_dimension_numbers<[1], [0], [0], [1], [0, 0, 1, 1], [], []>} : vector<8x8xf32>, vector<8x8xf32>, vector<8x8xf32> -> vector<8x8xf32>
    %cst_101 = arith.constant dense<0.000000e+00> : vector<8x8xf32>
    %177 = tpu.matmul %175, %171, %cst_101 {dimension_numbers = #tpu.dot_dimension_numbers<[1], [0], [0], [1], [0, 0, 1, 1], [], []>} : vector<8x8xf32>, vector<8x8xf32>, vector<8x8xf32> -> vector<8x8xf32>
    %cst_102 = arith.constant dense<0.000000e+00> : vector<8x8xf32>
    %178 = tpu.matmul %177, %176, %cst_102 {dimension_numbers = #tpu.dot_dimension_numbers<[1], [0], [0], [1], [0, 0, 1, 1], [], []>} : vector<8x8xf32>, vector<8x8xf32>, vector<8x8xf32> -> vector<8x8xf32>
    %179 = arith.subf %7, %178 : vector<8x8xf32>
    %cst_103 = arith.constant 5.000000e-01 : f32
    %180 = vector.broadcast %cst_103 : f32 to vector<8x8xf32>
    %181 = arith.mulf %180, %179 : vector<8x8xf32>
    %cst_104 = arith.constant dense<0.000000e+00> : vector<8x8xf32>
    %182 = tpu.matmul %176, %181, %cst_104 {dimension_numbers = #tpu.dot_dimension_numbers<[1], [0], [0], [1], [0, 0, 1, 1], [], []>} : vector<8x8xf32>, vector<8x8xf32>, vector<8x8xf32> -> vector<8x8xf32>
    %cst_105 = arith.constant dense<0.000000e+00> : vector<8x8xf32>
    %183 = tpu.matmul %181, %177, %cst_105 {dimension_numbers = #tpu.dot_dimension_numbers<[1], [0], [0], [1], [0, 0, 1, 1], [], []>} : vector<8x8xf32>, vector<8x8xf32>, vector<8x8xf32> -> vector<8x8xf32>
    %cst_106 = arith.constant dense<0.000000e+00> : vector<8x8xf32>
    %184 = tpu.matmul %183, %182, %cst_106 {dimension_numbers = #tpu.dot_dimension_numbers<[1], [0], [0], [1], [0, 0, 1, 1], [], []>} : vector<8x8xf32>, vector<8x8xf32>, vector<8x8xf32> -> vector<8x8xf32>
    %185 = arith.subf %7, %184 : vector<8x8xf32>
    %cst_107 = arith.constant 5.000000e-01 : f32
    %186 = vector.broadcast %cst_107 : f32 to vector<8x8xf32>
    %187 = arith.mulf %186, %185 : vector<8x8xf32>
    %cst_108 = arith.constant dense<0.000000e+00> : vector<8x8xf32>
    %188 = tpu.matmul %182, %187, %cst_108 {dimension_numbers = #tpu.dot_dimension_numbers<[1], [0], [0], [1], [0, 0, 1, 1], [], []>} : vector<8x8xf32>, vector<8x8xf32>, vector<8x8xf32> -> vector<8x8xf32>
    %cst_109 = arith.constant dense<0.000000e+00> : vector<8x8xf32>
    %189 = tpu.matmul %187, %183, %cst_109 {dimension_numbers = #tpu.dot_dimension_numbers<[1], [0], [0], [1], [0, 0, 1, 1], [], []>} : vector<8x8xf32>, vector<8x8xf32>, vector<8x8xf32> -> vector<8x8xf32>
    %cst_110 = arith.constant dense<0.000000e+00> : vector<8x8xf32>
    %190 = tpu.matmul %189, %188, %cst_110 {dimension_numbers = #tpu.dot_dimension_numbers<[1], [0], [0], [1], [0, 0, 1, 1], [], []>} : vector<8x8xf32>, vector<8x8xf32>, vector<8x8xf32> -> vector<8x8xf32>
    %191 = arith.subf %7, %190 : vector<8x8xf32>
    %cst_111 = arith.constant 5.000000e-01 : f32
    %192 = vector.broadcast %cst_111 : f32 to vector<8x8xf32>
    %193 = arith.mulf %192, %191 : vector<8x8xf32>
    %cst_112 = arith.constant dense<0.000000e+00> : vector<8x8xf32>
    %194 = tpu.matmul %188, %193, %cst_112 {dimension_numbers = #tpu.dot_dimension_numbers<[1], [0], [0], [1], [0, 0, 1, 1], [], []>} : vector<8x8xf32>, vector<8x8xf32>, vector<8x8xf32> -> vector<8x8xf32>
    %cst_113 = arith.constant dense<0.000000e+00> : vector<8x8xf32>
    %195 = tpu.matmul %193, %189, %cst_113 {dimension_numbers = #tpu.dot_dimension_numbers<[1], [0], [0], [1], [0, 0, 1, 1], [], []>} : vector<8x8xf32>, vector<8x8xf32>, vector<8x8xf32> -> vector<8x8xf32>
    %cst_114 = arith.constant dense<0.000000e+00> : vector<8x8xf32>
    %196 = tpu.matmul %195, %194, %cst_114 {dimension_numbers = #tpu.dot_dimension_numbers<[1], [0], [0], [1], [0, 0, 1, 1], [], []>} : vector<8x8xf32>, vector<8x8xf32>, vector<8x8xf32> -> vector<8x8xf32>
    %197 = arith.subf %7, %196 : vector<8x8xf32>
    %cst_115 = arith.constant 5.000000e-01 : f32
    %198 = vector.broadcast %cst_115 : f32 to vector<8x8xf32>
    %199 = arith.mulf %198, %197 : vector<8x8xf32>
    %cst_116 = arith.constant dense<0.000000e+00> : vector<8x8xf32>
    %200 = tpu.matmul %199, %195, %cst_116 {dimension_numbers = #tpu.dot_dimension_numbers<[1], [0], [0], [1], [0, 0, 1, 1], [], []>} : vector<8x8xf32>, vector<8x8xf32>, vector<8x8xf32> -> vector<8x8xf32>
    %201 = arith.addf %107, %119 : vector<16x8xf32>
    %202 = math.sqrt %127 : f32
    %203 = vector.broadcast %202 : f32 to vector<16x8xf32>
    %204 = arith.mulf %201, %203 : vector<16x8xf32>
    %cst_117 = arith.constant dense<0.000000e+00> : vector<16x8xf32>
    %205 = tpu.matmul %204, %200, %cst_117 {dimension_numbers = #tpu.dot_dimension_numbers<[1], [0], [0], [1], [0, 0, 1, 1], [], []>} : vector<16x8xf32>, vector<8x8xf32>, vector<16x8xf32> -> vector<16x8xf32>
    %c3 = arith.constant 3 : index
    %c0_118 = arith.constant 0 : index
    %c0_119 = arith.constant 0 : index
    %206 = vector.load %arg1[%c3, %c0_118, %c0_119] : memref<4x16x8xf32, #tpu.memory_space<vmem>>, vector<1x16x8xf32>
    %207 = vector.shape_cast %206 : vector<1x16x8xf32> to vector<16x8xf32>
    %c3_120 = arith.constant 3 : index
    %208 = memref.load %arg0[%c3_120] : memref<4xf32, #tpu.memory_space<smem>>
    %cst_121 = arith.constant dense<0.000000e+00> : vector<8x8xf32>
    %209 = tpu.matmul %207, %205, %cst_121 {dimension_numbers = #tpu.dot_dimension_numbers<[0], [0], [1], [1], [0, 1, 1, 1], [], []>} : vector<16x8xf32>, vector<16x8xf32>, vector<8x8xf32> -> vector<8x8xf32>
    %cst_122 = arith.constant dense<0.000000e+00> : vector<8x8xf32>
    %210 = tpu.matmul %205, %207, %cst_122 {dimension_numbers = #tpu.dot_dimension_numbers<[0], [0], [1], [1], [0, 1, 1, 1], [], []>} : vector<16x8xf32>, vector<16x8xf32>, vector<8x8xf32> -> vector<8x8xf32>
    %211 = arith.addf %209, %210 : vector<8x8xf32>
    %cst_123 = arith.constant dense<0.000000e+00> : vector<16x8xf32>
    %212 = tpu.matmul %205, %211, %cst_123 {dimension_numbers = #tpu.dot_dimension_numbers<[1], [0], [0], [1], [0, 0, 1, 1], [], []>} : vector<16x8xf32>, vector<8x8xf32>, vector<16x8xf32> -> vector<16x8xf32>
    %cst_124 = arith.constant 5.000000e-01 : f32
    %213 = vector.broadcast %cst_124 : f32 to vector<16x8xf32>
    %214 = arith.mulf %213, %212 : vector<16x8xf32>
    %215 = arith.subf %207, %214 : vector<16x8xf32>
    %216 = vector.broadcast %208 : f32 to vector<16x8xf32>
    %217 = arith.mulf %216, %215 : vector<16x8xf32>
    %cst_125 = arith.constant dense<0.000000e+00> : vector<8x8xf32>
    %218 = tpu.matmul %217, %217, %cst_125 {dimension_numbers = #tpu.dot_dimension_numbers<[0], [0], [1], [1], [0, 1, 1, 1], [], []>} : vector<16x8xf32>, vector<16x8xf32>, vector<8x8xf32> -> vector<8x8xf32>
    %219 = arith.addf %5, %218 : vector<8x8xf32>
    %220 = arith.mulf %219, %219 : vector<8x8xf32>
    %221 = vector.shape_cast %220 : vector<8x8xf32> to vector<1x8x8xf32>
    %cst_126 = arith.constant dense<0.000000e+00> : vector<1xf32>
    %222 = vector.multi_reduction <add>, %221, %cst_126 [1, 2] : vector<1x8x8xf32> to vector<1xf32>
    %223 = vector.shape_cast %222 : vector<1xf32> to vector<1x1x1xf32>
    %224 = vector.extract %223[0, 0, 0] : f32 from vector<1x1x1xf32>
    %225 = math.rsqrt %224 : f32
    %226 = vector.broadcast %225 : f32 to vector<8x8xf32>
    %227 = arith.mulf %219, %226 : vector<8x8xf32>
    %cst_127 = arith.constant dense<0.000000e+00> : vector<8x8xf32>
    %228 = tpu.matmul %5, %227, %cst_127 {dimension_numbers = #tpu.dot_dimension_numbers<[1], [0], [0], [1], [0, 0, 1, 1], [], []>} : vector<8x8xf32>, vector<8x8xf32>, vector<8x8xf32> -> vector<8x8xf32>
    %229 = arith.subf %7, %228 : vector<8x8xf32>
    %cst_128 = arith.constant 5.000000e-01 : f32
    %230 = vector.broadcast %cst_128 : f32 to vector<8x8xf32>
    %231 = arith.mulf %230, %229 : vector<8x8xf32>
    %cst_129 = arith.constant dense<0.000000e+00> : vector<8x8xf32>
    %232 = tpu.matmul %227, %231, %cst_129 {dimension_numbers = #tpu.dot_dimension_numbers<[1], [0], [0], [1], [0, 0, 1, 1], [], []>} : vector<8x8xf32>, vector<8x8xf32>, vector<8x8xf32> -> vector<8x8xf32>
    %cst_130 = arith.constant dense<0.000000e+00> : vector<8x8xf32>
    %233 = tpu.matmul %231, %5, %cst_130 {dimension_numbers = #tpu.dot_dimension_numbers<[1], [0], [0], [1], [0, 0, 1, 1], [], []>} : vector<8x8xf32>, vector<8x8xf32>, vector<8x8xf32> -> vector<8x8xf32>
    %cst_131 = arith.constant dense<0.000000e+00> : vector<8x8xf32>
    %234 = tpu.matmul %233, %232, %cst_131 {dimension_numbers = #tpu.dot_dimension_numbers<[1], [0], [0], [1], [0, 0, 1, 1], [], []>} : vector<8x8xf32>, vector<8x8xf32>, vector<8x8xf32> -> vector<8x8xf32>
    %235 = arith.subf %7, %234 : vector<8x8xf32>
    %cst_132 = arith.constant 5.000000e-01 : f32
    %236 = vector.broadcast %cst_132 : f32 to vector<8x8xf32>
    %237 = arith.mulf %236, %235 : vector<8x8xf32>
    %cst_133 = arith.constant dense<0.000000e+00> : vector<8x8xf32>
    %238 = tpu.matmul %232, %237, %cst_133 {dimension_numbers = #tpu.dot_dimension_numbers<[1], [0], [0], [1], [0, 0, 1, 1], [], []>} : vector<8x8xf32>, vector<8x8xf32>, vector<8x8xf32> -> vector<8x8xf32>
    %cst_134 = arith.constant dense<0.000000e+00> : vector<8x8xf32>
    %239 = tpu.matmul %237, %233, %cst_134 {dimension_numbers = #tpu.dot_dimension_numbers<[1], [0], [0], [1], [0, 0, 1, 1], [], []>} : vector<8x8xf32>, vector<8x8xf32>, vector<8x8xf32> -> vector<8x8xf32>
    %cst_135 = arith.constant dense<0.000000e+00> : vector<8x8xf32>
    %240 = tpu.matmul %239, %238, %cst_135 {dimension_numbers = #tpu.dot_dimension_numbers<[1], [0], [0], [1], [0, 0, 1, 1], [], []>} : vector<8x8xf32>, vector<8x8xf32>, vector<8x8xf32> -> vector<8x8xf32>
    %241 = arith.subf %7, %240 : vector<8x8xf32>
    %cst_136 = arith.constant 5.000000e-01 : f32
    %242 = vector.broadcast %cst_136 : f32 to vector<8x8xf32>
    %243 = arith.mulf %242, %241 : vector<8x8xf32>
    %cst_137 = arith.constant dense<0.000000e+00> : vector<8x8xf32>
    %244 = tpu.matmul %238, %243, %cst_137 {dimension_numbers = #tpu.dot_dimension_numbers<[1], [0], [0], [1], [0, 0, 1, 1], [], []>} : vector<8x8xf32>, vector<8x8xf32>, vector<8x8xf32> -> vector<8x8xf32>
    %cst_138 = arith.constant dense<0.000000e+00> : vector<8x8xf32>
    %245 = tpu.matmul %243, %239, %cst_138 {dimension_numbers = #tpu.dot_dimension_numbers<[1], [0], [0], [1], [0, 0, 1, 1], [], []>} : vector<8x8xf32>, vector<8x8xf32>, vector<8x8xf32> -> vector<8x8xf32>
    %cst_139 = arith.constant dense<0.000000e+00> : vector<8x8xf32>
    %246 = tpu.matmul %245, %244, %cst_139 {dimension_numbers = #tpu.dot_dimension_numbers<[1], [0], [0], [1], [0, 0, 1, 1], [], []>} : vector<8x8xf32>, vector<8x8xf32>, vector<8x8xf32> -> vector<8x8xf32>
    %247 = arith.subf %7, %246 : vector<8x8xf32>
    %cst_140 = arith.constant 5.000000e-01 : f32
    %248 = vector.broadcast %cst_140 : f32 to vector<8x8xf32>
    %249 = arith.mulf %248, %247 : vector<8x8xf32>
    %cst_141 = arith.constant dense<0.000000e+00> : vector<8x8xf32>
    %250 = tpu.matmul %244, %249, %cst_141 {dimension_numbers = #tpu.dot_dimension_numbers<[1], [0], [0], [1], [0, 0, 1, 1], [], []>} : vector<8x8xf32>, vector<8x8xf32>, vector<8x8xf32> -> vector<8x8xf32>
    %cst_142 = arith.constant dense<0.000000e+00> : vector<8x8xf32>
    %251 = tpu.matmul %249, %245, %cst_142 {dimension_numbers = #tpu.dot_dimension_numbers<[1], [0], [0], [1], [0, 0, 1, 1], [], []>} : vector<8x8xf32>, vector<8x8xf32>, vector<8x8xf32> -> vector<8x8xf32>
    %cst_143 = arith.constant dense<0.000000e+00> : vector<8x8xf32>
    %252 = tpu.matmul %251, %250, %cst_143 {dimension_numbers = #tpu.dot_dimension_numbers<[1], [0], [0], [1], [0, 0, 1, 1], [], []>} : vector<8x8xf32>, vector<8x8xf32>, vector<8x8xf32> -> vector<8x8xf32>
    %253 = arith.subf %7, %252 : vector<8x8xf32>
    %cst_144 = arith.constant 5.000000e-01 : f32
    %254 = vector.broadcast %cst_144 : f32 to vector<8x8xf32>
    %255 = arith.mulf %254, %253 : vector<8x8xf32>
    %cst_145 = arith.constant dense<0.000000e+00> : vector<8x8xf32>
    %256 = tpu.matmul %250, %255, %cst_145 {dimension_numbers = #tpu.dot_dimension_numbers<[1], [0], [0], [1], [0, 0, 1, 1], [], []>} : vector<8x8xf32>, vector<8x8xf32>, vector<8x8xf32> -> vector<8x8xf32>
    %cst_146 = arith.constant dense<0.000000e+00> : vector<8x8xf32>
    %257 = tpu.matmul %255, %251, %cst_146 {dimension_numbers = #tpu.dot_dimension_numbers<[1], [0], [0], [1], [0, 0, 1, 1], [], []>} : vector<8x8xf32>, vector<8x8xf32>, vector<8x8xf32> -> vector<8x8xf32>
    %cst_147 = arith.constant dense<0.000000e+00> : vector<8x8xf32>
    %258 = tpu.matmul %257, %256, %cst_147 {dimension_numbers = #tpu.dot_dimension_numbers<[1], [0], [0], [1], [0, 0, 1, 1], [], []>} : vector<8x8xf32>, vector<8x8xf32>, vector<8x8xf32> -> vector<8x8xf32>
    %259 = arith.subf %7, %258 : vector<8x8xf32>
    %cst_148 = arith.constant 5.000000e-01 : f32
    %260 = vector.broadcast %cst_148 : f32 to vector<8x8xf32>
    %261 = arith.mulf %260, %259 : vector<8x8xf32>
    %cst_149 = arith.constant dense<0.000000e+00> : vector<8x8xf32>
    %262 = tpu.matmul %256, %261, %cst_149 {dimension_numbers = #tpu.dot_dimension_numbers<[1], [0], [0], [1], [0, 0, 1, 1], [], []>} : vector<8x8xf32>, vector<8x8xf32>, vector<8x8xf32> -> vector<8x8xf32>
    %cst_150 = arith.constant dense<0.000000e+00> : vector<8x8xf32>
    %263 = tpu.matmul %261, %257, %cst_150 {dimension_numbers = #tpu.dot_dimension_numbers<[1], [0], [0], [1], [0, 0, 1, 1], [], []>} : vector<8x8xf32>, vector<8x8xf32>, vector<8x8xf32> -> vector<8x8xf32>
    %cst_151 = arith.constant dense<0.000000e+00> : vector<8x8xf32>
    %264 = tpu.matmul %263, %262, %cst_151 {dimension_numbers = #tpu.dot_dimension_numbers<[1], [0], [0], [1], [0, 0, 1, 1], [], []>} : vector<8x8xf32>, vector<8x8xf32>, vector<8x8xf32> -> vector<8x8xf32>
    %265 = arith.subf %7, %264 : vector<8x8xf32>
    %cst_152 = arith.constant 5.000000e-01 : f32
    %266 = vector.broadcast %cst_152 : f32 to vector<8x8xf32>
    %267 = arith.mulf %266, %265 : vector<8x8xf32>
    %cst_153 = arith.constant dense<0.000000e+00> : vector<8x8xf32>
    %268 = tpu.matmul %262, %267, %cst_153 {dimension_numbers = #tpu.dot_dimension_numbers<[1], [0], [0], [1], [0, 0, 1, 1], [], []>} : vector<8x8xf32>, vector<8x8xf32>, vector<8x8xf32> -> vector<8x8xf32>
    %cst_154 = arith.constant dense<0.000000e+00> : vector<8x8xf32>
    %269 = tpu.matmul %267, %263, %cst_154 {dimension_numbers = #tpu.dot_dimension_numbers<[1], [0], [0], [1], [0, 0, 1, 1], [], []>} : vector<8x8xf32>, vector<8x8xf32>, vector<8x8xf32> -> vector<8x8xf32>
    %cst_155 = arith.constant dense<0.000000e+00> : vector<8x8xf32>
    %270 = tpu.matmul %269, %268, %cst_155 {dimension_numbers = #tpu.dot_dimension_numbers<[1], [0], [0], [1], [0, 0, 1, 1], [], []>} : vector<8x8xf32>, vector<8x8xf32>, vector<8x8xf32> -> vector<8x8xf32>
    %271 = arith.subf %7, %270 : vector<8x8xf32>
    %cst_156 = arith.constant 5.000000e-01 : f32
    %272 = vector.broadcast %cst_156 : f32 to vector<8x8xf32>
    %273 = arith.mulf %272, %271 : vector<8x8xf32>
    %cst_157 = arith.constant dense<0.000000e+00> : vector<8x8xf32>
    %274 = tpu.matmul %268, %273, %cst_157 {dimension_numbers = #tpu.dot_dimension_numbers<[1], [0], [0], [1], [0, 0, 1, 1], [], []>} : vector<8x8xf32>, vector<8x8xf32>, vector<8x8xf32> -> vector<8x8xf32>
    %cst_158 = arith.constant dense<0.000000e+00> : vector<8x8xf32>
    %275 = tpu.matmul %273, %269, %cst_158 {dimension_numbers = #tpu.dot_dimension_numbers<[1], [0], [0], [1], [0, 0, 1, 1], [], []>} : vector<8x8xf32>, vector<8x8xf32>, vector<8x8xf32> -> vector<8x8xf32>
    %cst_159 = arith.constant dense<0.000000e+00> : vector<8x8xf32>
    %276 = tpu.matmul %275, %274, %cst_159 {dimension_numbers = #tpu.dot_dimension_numbers<[1], [0], [0], [1], [0, 0, 1, 1], [], []>} : vector<8x8xf32>, vector<8x8xf32>, vector<8x8xf32> -> vector<8x8xf32>
    %277 = arith.subf %7, %276 : vector<8x8xf32>
    %cst_160 = arith.constant 5.000000e-01 : f32
    %278 = vector.broadcast %cst_160 : f32 to vector<8x8xf32>
    %279 = arith.mulf %278, %277 : vector<8x8xf32>
    %cst_161 = arith.constant dense<0.000000e+00> : vector<8x8xf32>
    %280 = tpu.matmul %274, %279, %cst_161 {dimension_numbers = #tpu.dot_dimension_numbers<[1], [0], [0], [1], [0, 0, 1, 1], [], []>} : vector<8x8xf32>, vector<8x8xf32>, vector<8x8xf32> -> vector<8x8xf32>
    %cst_162 = arith.constant dense<0.000000e+00> : vector<8x8xf32>
    %281 = tpu.matmul %279, %275, %cst_162 {dimension_numbers = #tpu.dot_dimension_numbers<[1], [0], [0], [1], [0, 0, 1, 1], [], []>} : vector<8x8xf32>, vector<8x8xf32>, vector<8x8xf32> -> vector<8x8xf32>
    %cst_163 = arith.constant dense<0.000000e+00> : vector<8x8xf32>
    %282 = tpu.matmul %281, %280, %cst_163 {dimension_numbers = #tpu.dot_dimension_numbers<[1], [0], [0], [1], [0, 0, 1, 1], [], []>} : vector<8x8xf32>, vector<8x8xf32>, vector<8x8xf32> -> vector<8x8xf32>
    %283 = arith.subf %7, %282 : vector<8x8xf32>
    %cst_164 = arith.constant 5.000000e-01 : f32
    %284 = vector.broadcast %cst_164 : f32 to vector<8x8xf32>
    %285 = arith.mulf %284, %283 : vector<8x8xf32>
    %cst_165 = arith.constant dense<0.000000e+00> : vector<8x8xf32>
    %286 = tpu.matmul %280, %285, %cst_165 {dimension_numbers = #tpu.dot_dimension_numbers<[1], [0], [0], [1], [0, 0, 1, 1], [], []>} : vector<8x8xf32>, vector<8x8xf32>, vector<8x8xf32> -> vector<8x8xf32>
    %cst_166 = arith.constant dense<0.000000e+00> : vector<8x8xf32>
    %287 = tpu.matmul %285, %281, %cst_166 {dimension_numbers = #tpu.dot_dimension_numbers<[1], [0], [0], [1], [0, 0, 1, 1], [], []>} : vector<8x8xf32>, vector<8x8xf32>, vector<8x8xf32> -> vector<8x8xf32>
    %cst_167 = arith.constant dense<0.000000e+00> : vector<8x8xf32>
    %288 = tpu.matmul %287, %286, %cst_167 {dimension_numbers = #tpu.dot_dimension_numbers<[1], [0], [0], [1], [0, 0, 1, 1], [], []>} : vector<8x8xf32>, vector<8x8xf32>, vector<8x8xf32> -> vector<8x8xf32>
    %289 = arith.subf %7, %288 : vector<8x8xf32>
    %cst_168 = arith.constant 5.000000e-01 : f32
    %290 = vector.broadcast %cst_168 : f32 to vector<8x8xf32>
    %291 = arith.mulf %290, %289 : vector<8x8xf32>
    %cst_169 = arith.constant dense<0.000000e+00> : vector<8x8xf32>
    %292 = tpu.matmul %286, %291, %cst_169 {dimension_numbers = #tpu.dot_dimension_numbers<[1], [0], [0], [1], [0, 0, 1, 1], [], []>} : vector<8x8xf32>, vector<8x8xf32>, vector<8x8xf32> -> vector<8x8xf32>
    %cst_170 = arith.constant dense<0.000000e+00> : vector<8x8xf32>
    %293 = tpu.matmul %291, %287, %cst_170 {dimension_numbers = #tpu.dot_dimension_numbers<[1], [0], [0], [1], [0, 0, 1, 1], [], []>} : vector<8x8xf32>, vector<8x8xf32>, vector<8x8xf32> -> vector<8x8xf32>
    %cst_171 = arith.constant dense<0.000000e+00> : vector<8x8xf32>
    %294 = tpu.matmul %293, %292, %cst_171 {dimension_numbers = #tpu.dot_dimension_numbers<[1], [0], [0], [1], [0, 0, 1, 1], [], []>} : vector<8x8xf32>, vector<8x8xf32>, vector<8x8xf32> -> vector<8x8xf32>
    %295 = arith.subf %7, %294 : vector<8x8xf32>
    %cst_172 = arith.constant 5.000000e-01 : f32
    %296 = vector.broadcast %cst_172 : f32 to vector<8x8xf32>
    %297 = arith.mulf %296, %295 : vector<8x8xf32>
    %cst_173 = arith.constant dense<0.000000e+00> : vector<8x8xf32>
    %298 = tpu.matmul %297, %293, %cst_173 {dimension_numbers = #tpu.dot_dimension_numbers<[1], [0], [0], [1], [0, 0, 1, 1], [], []>} : vector<8x8xf32>, vector<8x8xf32>, vector<8x8xf32> -> vector<8x8xf32>
    %299 = arith.addf %205, %217 : vector<16x8xf32>
    %300 = math.sqrt %225 : f32
    %301 = vector.broadcast %300 : f32 to vector<16x8xf32>
    %302 = arith.mulf %299, %301 : vector<16x8xf32>
    %cst_174 = arith.constant dense<0.000000e+00> : vector<16x8xf32>
    %303 = tpu.matmul %302, %298, %cst_174 {dimension_numbers = #tpu.dot_dimension_numbers<[1], [0], [0], [1], [0, 0, 1, 1], [], []>} : vector<16x8xf32>, vector<8x8xf32>, vector<16x8xf32> -> vector<16x8xf32>
    %c0_175 = arith.constant 0 : index
    %c0_176 = arith.constant 0 : index
    %304 = vector.load %arg2[%c0_175, %c0_176] : memref<16x8xf32, #tpu.memory_space<vmem>>, vector<16x8xf32>
    tpu.vector_store %arg2[%c0_175, %c0_176], %303 {strides = array<i32>} : memref<16x8xf32, #tpu.memory_space<vmem>>, vector<16x8xf32>,
    return
  }
}

</mosaic_0001>

<bundles_post_ra>
// kernel: tpu_custom_call.1
= control target key start
LH: loop header
LB: loop body
LE: loop exit
PB: predicated region body
PF: predicated region fallthrough
CT: control target
= control target key end

     0   :  { %7 = vsyncpa [#allocation3], 0  ;;  %s11070_s0 = inlined_call_operand.vmem [shape: f32[4], index: 0, kind: input, shape index: {}]   ;;  %s11071_s1 = inlined_call_operand.vmem [shape: f32[4,16,8], index: 1, kind: input, shape index: {}]   ;;  %s11072_s2 = inlined_call_operand.vmem [shape: f32[16,8], index: 2, kind: output, shape index: {}]  }
   0x1   :  { %s14_s11 = sshll.u32 %s11070_s0, 4  ;;  %s15_s11 = int_to_ptr.vmem [resolvable:$true] %s14_s11 }
   0x2   :  { %s10408_s12 = scalar_lea.vmem %s15_s11, 16  ;;  %p10413_p1 = scmp.lt.s32.totalorder %s15_s11, %s15_s11 }
   0x3   :  { %p10409_p0 = scmp.ne.s32.totalorder %s15_s11, %s10408_s12  ;;  %p10414_p2 = scmp.lt.s32.totalorder %s10408_s12, %s10408_s12 }
   0x5   :  { %p10415_p3 = por %p10414_p2, %p10413_p1 }
   0x7   :  { %p10416_p4 = pnand %p10415_p3, %p10409_p0 }
   0x9   :  { %10419 = shalt.err (!%p10416_p4)
}
   0xa   :  { %s10422_s13 = smov [#allocation2]  }
   0xb   :  { %17 = dma.vmem_to_smem %s15_s11, 16, %s10422_s13, [#allocation3]  }
   0xc   :  { %10420 = dma.done.wait [#allocation3], 16  }
   0xd   :  { %10421 = vsyncadd [#allocation3], 4294967280 }
   0xe   :  { %23 = sfence }
   0xf   :  { %v10448_v0 = vld [vmem:[%s11071_s1] sm:$0xff]  ;;  %v9330_v1 = vld [vmem:[%s11071_s1 + $0x10] sm:$0xff]  ;;  %v9331_v2 = vld [vmem:[%s11071_s1 + $0x18] sm:$0xff]  ;;  %v10423_v4 = vmov 0.0|0.0   ;;  %vm10424_vm0 = vmmov 0   ;;  %v10425_v6 = vmov 0.0   ;;  %v24_v23 = vlaneseq }
  0x10   :  { %37 = vxpose.xlu0.b32.start [1/2] (short) (narrow) %v10448_v0, 8  ;;  %143 = vxpose.xlu1.b32.start [1/2] (short) (narrow) %v9330_v1, 8  ;;  %v10460_v3 = vld [vmem:[%s11071_s1 + $0x8] sm:$0xff]  ;;  %v10341_v5 = vpack.c.bf16 %v9331_v2, %v9330_v1  ;;  %vm69_vm1 = vcmask 130048   ;;  %vm248_vm2 = vcmask 64512   ;;  %s36_s21 = sld [smem:[#allocation2]] }
  0x11   :  { %10340 = vmatprep.subr.bf16.mxu0 %v10423_v4  ;;  %9726 = vmatprep.mubr.msk.f32.mxu0 %vm10424_vm0, %v10425_v6  ;;  %v10344_v7 = vpack.c.bf16 %v10460_v3, %v10448_v0  ;;  %v10491_v24 = vshrl.u32 %v24_v23, 7  ;;  %v10493_v25 = vand.u32 127, %v24_v23  ;;  %v10426_v51 = vmov 1.0   ;;  %s9377_s29 = sld [smem:[#allocation2 + $0x2]] }
  0x12   :  { %10342 = vmatpush3.bf16.msra.mxu0 %v10341_v5  ;;  %9738 = vmatprep.mubr.msk.f32.mxu1 %vm248_vm2, %v10448_v0 }
  0x13   :  { %10343 = vmatprep.subr.bf16.mxu0 %v10423_v4  ;;  %vm28_vm3 = vcmp.eq.s32.totalorder %v10491_v24, %v10493_v25 }
  0x14   :  { %38 = vxpose.xlu0.b32.end [2/2] (short) (narrow) %v10460_v3, 8  ;;  %144 = vxpose.xlu1.b32.end [2/2] (short) (narrow) %v9331_v2, 8  ;;  %v10501_v26 = vsel %vm28_vm3, 1.0, %v10425_v6 }
  0x15   :  { %v10524_v52 = vmul.f32 3.0, %v10501_v26 }
  0x16   :  { %v334_v15 = vstv %s36_s21 }
  0x90   :  { %v53_v8 = vpop.trf.xlu0  ;;  %v159_v9 = vpop.trf.xlu1 }
  0x91   :  { %9727 = vmatmul.mubr.msk.f32.vlgmr.msra.gmra.mrb[0].mxu0 %vm69_vm1, %v53_v8 }
  0x92   :  { %10345 = vmatpush3.bf16.msra.mxu0 %v10344_v7  ;;  %9733 = vmatprep.mubr.msk.f32.mxu0 %vm10424_vm0, %v10425_v6 }
  0x93   :  { %9753 = vmatprep.subr.mxu0 %v10425_v6 }
  0x99   :  { %9734 = vmatmul.mubr.msk.f32.vlgmr.msra.gmra.mrb[0].mxu0 %vm69_vm1, %v159_v9 }
  0x9a   :  { %9755 = vmatprep.mubr.msk.f32.mxu0 %vm10424_vm0, %v10425_v6 }
 0x16c   :  { %v244_v10 = vpop.f32.mrb[0].mxu0 }
 0x16d   :  { %v9735_v11 = vpop.f32.mrb[1].mxu0  ;;  %9736 = vmatprep.subr.mxu1 %v244_v10 }
 0x16e   :  { %9737 = vmatpush3.msra.mxu1 %v244_v10 }
 0x16f   :  { %9739 = vmatmul.mubr.msk.f32.vlgmr.msra.gmra.mrb[0].mxu1 %vm248_vm2, %v10460_v3  ;;  %10346 = vmatprep.subr.bf16.mxu1 %v10423_v4 }
 0x170   :  { %9745 = vmatprep.mubr.msk.f32.mxu1 %vm10424_vm0, %v10425_v6 }
 0x242   :  { %v9740_v12 = vpop.f32.mrb[0].mxu1 }
 0x243   :  { %v331_v13 = vmul.f32 0.5, %v9740_v12  ;;  %v321_v14 = vpop.f32.mrb[1].mxu1 }
 0x244   :  { %v330_v16 = vmul.f32 0.5, %v321_v14 }
 0x245   :  { %v333_v17 = vsub.f32 %v9331_v2, %v331_v13 }
 0x246   :  { %v332_v18 = vsub.f32 %v9330_v1, %v330_v16 }
 0x247   :  { %v336_v19 = vmul.f32 %v334_v15, %v333_v17 }
 0x248   :  { %v10483_v20 = vmul.f32 %v334_v15, %v332_v18 }
 0x249   :  { %v3039_v48 = vadd.f32 %v336_v19, %v10460_v3 }
 0x24a   :  { %337 = vxpose.xlu0.b32.start [1/2] (short) (narrow) %v10483_v20, 8  ;;  %v10347_v21 = vpack.c.bf16 %v336_v19, %v10483_v20 }
 0x24c   :  { %10348 = vmatpush3.bf16.msra.mxu1 %v10347_v21 }
 0x24d   :  { %9748 = vmatprep.subr.mxu1 %v10425_v6 }
 0x24e   :  { %338 = vxpose.xlu0.b32.end [2/2] (short) (narrow) %v336_v19, 8 }
 0x2ca   :  { %v353_v22 = vpop.trf.xlu0 }
 0x2cb   :  { %9746 = vmatmul.mubr.msk.f32.vlgmr.msra.gmra.mrb[2].mxu1 %vm69_vm1, %v353_v22 }
 0x2cc   :  { %9750 = vmatprep.mubr.msk.f32.mxu1 %vm10424_vm0, %v10425_v6 }
 0x39e   :  { %v438_v27 = vpop.f32.mrb[2].mxu1 }
 0x39f   :  { %v442_v28 = vadd.f32 %v438_v27, %v10501_v26  ;;  %v9747_v29 = vpop.f32.mrb[3].mxu1 }
 0x3a1   :  { %v443_v30 = vmul.f32 %v442_v28, %v442_v28 }
 0x3a3   :  { %v444_v31 = vsel %vm248_vm2, %v443_v30, 0.0 }
 0x3a4   :  { %445 = vadd.xlane.f32.xlu1 %v444_v31 }
 0x431   :  { %v446_v32 = vpop.xlane.xlu1 %445 }
 0x432   :  { %v447_v33 = vrot.slane %v446_v32, 4 }
 0x434   :  { %v448_v34 = vadd.f32 %v447_v33, %v446_v32 }
 0x436   :  { %v449_v35 = vrot.slane %v448_v34, 2 }
 0x438   :  { %v450_v36 = vadd.f32 %v449_v35, %v448_v34 }
 0x43a   :  { %v451_v37 = vrot.slane %v450_v36, 1 }
 0x43c   :  { %v452_v38 = vadd.f32 %v451_v37, %v450_v36 }
 0x43e   :  { %10373 = vpush %v452_v38 }
 0x46f   :  { %s10374_s22 = spop %10373 }
 0x470   :  { %v454_v39 = vstv %s10374_s22 }
 0x471   :  { %10396 = vrsqrt.f32 %v454_v39 }
 0x47b   :  { %v10397_v40 = vpop.eup %10396 }
 0x47c   :  { %10375 = vpush %v10397_v40 }
 0x4ad   :  { %s10376_s23 = spop %10375 }
 0x4ae   :  { %v457_v41 = vstv %s10376_s23 }
 0x4af   :  { %10398 = vrsqrt.f32 %v457_v41  ;;  %v458_v42 = vmul.f32 %v457_v41, %v442_v28  ;;  %vm3043_vm4 = vcmp.eq.f32.partialorder %v457_v41, inf  ;;  %v3046_v45 = vand.u32 2147483648, %v457_v41 }
 0x4b0   :  { %vm3045_vm5 = vcmp.eq.f32.partialorder %v457_v41, 0.0 }
 0x4b1   :  { %9749 = vmatpush3.msra.mxu1 %v458_v42 }
 0x4b2   :  { %9751 = vmatmul.mubr.msk.f32.vlgmr.msra.gmra.mrb[4].mxu1 %vm248_vm2, %v10501_v26  ;;  %9758 = vmatprep.subr.mxu1 %v10425_v6 }
 0x4b3   :  { %9760 = vmatprep.mubr.msk.f32.mxu1 %vm10424_vm0, %v10425_v6  ;;  %9759 = vmatpush3.msk.msra.mxu1 %vm28_vm3, %v10426_v51 }
 0x4b4   :  { %9768 = vmatprep.subr.mxu1 %v10425_v6 }
 0x4b9   :  { %v10399_v43 = vpop.eup %10398 }
 0x4ba   :  { %v3042_v44 = vmul.f32 %v10399_v43, %v457_v41 }
 0x4bc   :  { %v3044_v46 = vsel %vm3043_vm4, %v457_v41, %v3042_v44 }
 0x4bd   :  { %v3047_v47 = vsel %vm3045_vm5, %v3046_v45, %v3044_v46 }
 0x4be   :  { %10377 = vpush %v3047_v47 }
 0x4ef   :  { %s10511_s24 = spop %10377 }
 0x4f0   :  { %v3049_v49 = vstv %s10511_s24 }
 0x4f1   :  { %v10516_v50 = vmul.f32 %v3049_v49, %v3039_v48 }
 0x585   :  { %v528_v53 = vpop.f32.mrb[4].mxu1 }
 0x586   :  { %v532_v54 = vsub.f32 %v10524_v52, %v528_v53  ;;  %v9752_v55 = vpop.f32.mrb[5].mxu1 }
 0x588   :  { %v533_v56 = vmul.f32 0.5, %v532_v54 }
 0x58a   :  { %9754 = vmatpush3.msra.mxu0 %v533_v56  ;;  %9761 = vmatmul.mubr.msk.f32.vlgmr.msra.gmra.mrb[6].mxu1 %vm248_vm2, %v533_v56 }
 0x58b   :  { %9756 = vmatmul.mubr.msk.f32.vlgmr.msra.gmra.mrb[2].mxu0 %vm248_vm2, %v458_v42  ;;  %9763 = vmatprep.subr.mxu0 %v10425_v6 }
 0x58c   :  { %9765 = vmatprep.mubr.msk.f32.mxu0 %vm10424_vm0, %v10425_v6  ;;  %9770 = vmatprep.mubr.msk.f32.mxu1 %vm10424_vm0, %v10425_v6 }
 0x65d   :  { %v676_v57 = vpop.f32.mrb[6].mxu1 }
 0x65e   :  { %v603_v58 = vpop.f32.mrb[2].mxu0  ;;  %v9762_v59 = vpop.f32.mrb[7].mxu1 }
 0x65f   :  { %v9757_v60 = vpop.f32.mrb[3].mxu0  ;;  %9764 = vmatpush3.msra.mxu0 %v603_v58 }
 0x660   :  { %9766 = vmatmul.mubr.msk.f32.vlgmr.msra.gmra.mrb[4].mxu0 %vm248_vm2, %v676_v57  ;;  %9773 = vmatprep.subr.mxu0 %v10425_v6 }
 0x661   :  { %9774 = vmatpush3.msra.mxu0 %v676_v57  ;;  %9775 = vmatprep.mubr.msk.f32.mxu0 %vm10424_vm0, %v10425_v6 }
 0x662   :  { %9783 = vmatprep.subr.mxu0 %v10425_v6 }
 0x733   :  { %v749_v61 = vpop.f32.mrb[4].mxu0 }
 0x734   :  { %v753_v62 = vsub.f32 %v10524_v52, %v749_v61  ;;  %v9767_v63 = vpop.f32.mrb[5].mxu0 }
 0x736   :  { %v754_v1 = vmul.f32 0.5, %v753_v62 }
 0x738   :  { %9769 = vmatpush3.msra.mxu1 %v754_v1  ;;  %9776 = vmatmul.mubr.msk.f32.vlgmr.msra.gmra.mrb[6].mxu0 %vm248_vm2, %v754_v1 }
 0x739   :  { %9771 = vmatmul.mubr.msk.f32.vlgmr.msra.gmra.mrb[8].mxu1 %vm248_vm2, %v603_v58  ;;  %9778 = vmatprep.subr.mxu1 %v10425_v6 }
 0x73a   :  { %9780 = vmatprep.mubr.msk.f32.mxu1 %vm10424_vm0, %v10425_v6  ;;  %9785 = vmatprep.mubr.msk.f32.mxu0 %vm10424_vm0, %v10425_v6 }
 0x80b   :  { %v897_v2 = vpop.f32.mrb[6].mxu0 }
 0x80c   :  { %v824_v3 = vpop.f32.mrb[8].mxu1  ;;  %v9777_v5 = vpop.f32.mrb[7].mxu0 }
 0x80d   :  { %v9772_v7 = vpop.f32.mrb[9].mxu1  ;;  %9779 = vmatpush3.msra.mxu1 %v824_v3 }
 0x80e   :  { %9781 = vmatmul.mubr.msk.f32.vlgmr.msra.gmra.mrb[10].mxu1 %vm248_vm2, %v897_v2  ;;  %9788 = vmatprep.subr.mxu1 %v10425_v6 }
 0x80f   :  { %9789 = vmatpush3.msra.mxu1 %v897_v2  ;;  %9790 = vmatprep.mubr.msk.f32.mxu1 %vm10424_vm0, %v10425_v6 }
 0x810   :  { %9798 = vmatprep.subr.mxu1 %v10425_v6 }
 0x8e1   :  { %v970_v8 = vpop.f32.mrb[10].mxu1 }
 0x8e2   :  { %v974_v9 = vsub.f32 %v10524_v52, %v970_v8  ;;  %v9782_v10 = vpop.f32.mrb[11].mxu1 }
 0x8e4   :  { %v975_v11 = vmul.f32 0.5, %v974_v9 }
 0x8e6   :  { %9784 = vmatpush3.msra.mxu0 %v975_v11  ;;  %9791 = vmatmul.mubr.msk.f32.vlgmr.msra.gmra.mrb[12].mxu1 %vm248_vm2, %v975_v11 }
 0x8e7   :  { %9786 = vmatmul.mubr.msk.f32.vlgmr.msra.gmra.mrb[8].mxu0 %vm248_vm2, %v824_v3  ;;  %9793 = vmatprep.subr.mxu0 %v10425_v6 }
 0x8e8   :  { %9795 = vmatprep.mubr.msk.f32.mxu0 %vm10424_vm0, %v10425_v6  ;;  %9800 = vmatprep.mubr.msk.f32.mxu1 %vm10424_vm0, %v10425_v6 }
 0x9b9   :  { %v1118_v12 = vpop.f32.mrb[12].mxu1 }
 0x9ba   :  { %v1045_v13 = vpop.f32.mrb[8].mxu0  ;;  %v9792_v14 = vpop.f32.mrb[13].mxu1 }
 0x9bb   :  { %v9787_v15 = vpop.f32.mrb[9].mxu0  ;;  %9794 = vmatpush3.msra.mxu0 %v1045_v13 }
 0x9bc   :  { %9796 = vmatmul.mubr.msk.f32.vlgmr.msra.gmra.mrb[10].mxu0 %vm248_vm2, %v1118_v12  ;;  %9803 = vmatprep.subr.mxu0 %v10425_v6 }
 0x9bd   :  { %9804 = vmatpush3.msra.mxu0 %v1118_v12  ;;  %9805 = vmatprep.mubr.msk.f32.mxu0 %vm10424_vm0, %v10425_v6 }
 0x9be   :  { %9813 = vmatprep.subr.mxu0 %v10425_v6 }
 0xa8f   :  { %v1191_v16 = vpop.f32.mrb[10].mxu0 }
 0xa90   :  { %v1195_v17 = vsub.f32 %v10524_v52, %v1191_v16  ;;  %v9797_v18 = vpop.f32.mrb[11].mxu0 }
 0xa92   :  { %v1196_v19 = vmul.f32 0.5, %v1195_v17 }
 0xa94   :  { %9799 = vmatpush3.msra.mxu1 %v1196_v19  ;;  %9806 = vmatmul.mubr.msk.f32.vlgmr.msra.gmra.mrb[12].mxu0 %vm248_vm2, %v1196_v19 }
 0xa95   :  { %9801 = vmatmul.mubr.msk.f32.vlgmr.msra.gmra.mrb[14].mxu1 %vm248_vm2, %v1045_v13  ;;  %9808 = vmatprep.subr.mxu1 %v10425_v6 }
 0xa96   :  { %9810 = vmatprep.mubr.msk.f32.mxu1 %vm10424_vm0, %v10425_v6  ;;  %9815 = vmatprep.mubr.msk.f32.mxu0 %vm10424_vm0, %v10425_v6 }
 0xb67   :  { %v1339_v21 = vpop.f32.mrb[12].mxu0 }
 0xb68   :  { %v1266_v22 = vpop.f32.mrb[14].mxu1  ;;  %v9807_v23 = vpop.f32.mrb[13].mxu0 }
 0xb69   :  { %v9802_v27 = vpop.f32.mrb[15].mxu1  ;;  %9809 = vmatpush3.msra.mxu1 %v1266_v22 }
 0xb6a   :  { %9811 = vmatmul.mubr.msk.f32.vlgmr.msra.gmra.mrb[16].mxu1 %vm248_vm2, %v1339_v21  ;;  %9818 = vmatprep.subr.mxu1 %v10425_v6  ;;  %v3038_v27 = vadd.f32 %v10483_v20, %v10448_v0 }
 0xb6b   :  { %9819 = vmatpush3.msra.mxu1 %v1339_v21  ;;  %9820 = vmatprep.mubr.msk.f32.mxu1 %vm10424_vm0, %v10425_v6 }
 0xb6c   :  { %9828 = vmatprep.subr.mxu1 %v10425_v6 }
 0xc3d   :  { %v1412_v28 = vpop.f32.mrb[16].mxu1 }
 0xc3e   :  { %v1416_v29 = vsub.f32 %v10524_v52, %v1412_v28  ;;  %v9812_v30 = vpop.f32.mrb[17].mxu1 }
 0xc40   :  { %v1417_v31 = vmul.f32 0.5, %v1416_v29 }
 0xc42   :  { %9814 = vmatpush3.msra.mxu0 %v1417_v31  ;;  %9821 = vmatmul.mubr.msk.f32.vlgmr.msra.gmra.mrb[18].mxu1 %vm248_vm2, %v1417_v31  ;;  %v3050_v31 = vmul.f32 %v3049_v49, %v3038_v27  ;;  %v9375_v49 = vld [vmem:[%s11071_s1 + $0x20] sm:$0xff] }
 0xc43   :  { %9816 = vmatmul.mubr.msk.f32.vlgmr.msra.gmra.mrb[14].mxu0 %vm248_vm2, %v1266_v22  ;;  %9823 = vmatprep.subr.mxu0 %v10425_v6 }
 0xc44   :  { %9825 = vmatprep.mubr.msk.f32.mxu0 %vm10424_vm0, %v10425_v6  ;;  %9830 = vmatprep.mubr.msk.f32.mxu1 %vm10424_vm0, %v10425_v6 }
 0xd15   :  { %v1560_v32 = vpop.f32.mrb[18].mxu1 }
 0xd16   :  { %v1487_v33 = vpop.f32.mrb[14].mxu0  ;;  %v9822_v34 = vpop.f32.mrb[19].mxu1 }
 0xd17   :  { %v9817_v35 = vpop.f32.mrb[15].mxu0  ;;  %9824 = vmatpush3.msra.mxu0 %v1487_v33 }
 0xd18   :  { %9826 = vmatmul.mubr.msk.f32.vlgmr.msra.gmra.mrb[16].mxu0 %vm248_vm2, %v1560_v32  ;;  %9833 = vmatprep.subr.mxu0 %v10425_v6 }
 0xd19   :  { %9834 = vmatpush3.msra.mxu0 %v1560_v32  ;;  %9835 = vmatprep.mubr.msk.f32.mxu0 %vm10424_vm0, %v10425_v6 }
 0xd1a   :  { %9843 = vmatprep.subr.mxu0 %v10425_v6 }
 0xdeb   :  { %v1633_v36 = vpop.f32.mrb[16].mxu0 }
 0xdec   :  { %v1637_v37 = vsub.f32 %v10524_v52, %v1633_v36  ;;  %v9827_v38 = vpop.f32.mrb[17].mxu0 }
 0xdee   :  { %v1638_v39 = vmul.f32 0.5, %v1637_v37  ;;  %v9376_v37 = vld [vmem:[%s11071_s1 + $0x28] sm:$0xff] }
 0xdef   :  { %v10350_v38 = vpack.c.bf16 %v9376_v37, %v9375_v49 }
 0xdf0   :  { %9829 = vmatpush3.msra.mxu1 %v1638_v39  ;;  %9836 = vmatmul.mubr.msk.f32.vlgmr.msra.gmra.mrb[18].mxu0 %vm248_vm2, %v1638_v39 }
 0xdf1   :  { %9831 = vmatmul.mubr.msk.f32.vlgmr.msra.gmra.mrb[20].mxu1 %vm248_vm2, %v1487_v33  ;;  %9838 = vmatprep.subr.mxu1 %v10425_v6 }
 0xdf2   :  { %9840 = vmatprep.mubr.msk.f32.mxu1 %vm10424_vm0, %v10425_v6  ;;  %9845 = vmatprep.mubr.msk.f32.mxu0 %vm10424_vm0, %v10425_v6 }
 0xec3   :  { %v1781_v40 = vpop.f32.mrb[18].mxu0 }
 0xec4   :  { %v1708_v41 = vpop.f32.mrb[20].mxu1  ;;  %v9837_v42 = vpop.f32.mrb[19].mxu0 }
 0xec5   :  { %v9832_v43 = vpop.f32.mrb[21].mxu1  ;;  %9839 = vmatpush3.msra.mxu1 %v1708_v41 }
 0xec6   :  { %9841 = vmatmul.mubr.msk.f32.vlgmr.msra.gmra.mrb[22].mxu1 %vm248_vm2, %v1781_v40  ;;  %9848 = vmatprep.subr.mxu1 %v10425_v6 }
 0xec7   :  { %9849 = vmatpush3.msra.mxu1 %v1781_v40  ;;  %9850 = vmatprep.mubr.msk.f32.mxu1 %vm10424_vm0, %v10425_v6 }
 0xec8   :  { %9858 = vmatprep.subr.mxu1 %v10425_v6 }
 0xf99   :  { %v1854_v44 = vpop.f32.mrb[22].mxu1 }
 0xf9a   :  { %v1858_v45 = vsub.f32 %v10524_v52, %v1854_v44  ;;  %v9842_v46 = vpop.f32.mrb[23].mxu1 }
 0xf9c   :  { %v1859_v47 = vmul.f32 0.5, %v1858_v45 }
 0xf9e   :  { %9844 = vmatpush3.msra.mxu0 %v1859_v47  ;;  %9851 = vmatmul.mubr.msk.f32.vlgmr.msra.gmra.mrb[24].mxu1 %vm248_vm2, %v1859_v47 }
 0xf9f   :  { %9846 = vmatmul.mubr.msk.f32.vlgmr.msra.gmra.mrb[20].mxu0 %vm248_vm2, %v1708_v41  ;;  %9853 = vmatprep.subr.mxu0 %v10425_v6 }
 0xfa0   :  { %9855 = vmatprep.mubr.msk.f32.mxu0 %vm10424_vm0, %v10425_v6  ;;  %9860 = vmatprep.mubr.msk.f32.mxu1 %vm10424_vm0, %v10425_v6 }
0x1071   :  { %v2002_v48 = vpop.f32.mrb[24].mxu1 }
0x1072   :  { %v1929_v53 = vpop.f32.mrb[20].mxu0  ;;  %v9852_v54 = vpop.f32.mrb[25].mxu1 }
0x1073   :  { %v9847_v55 = vpop.f32.mrb[21].mxu0  ;;  %9854 = vmatpush3.msra.mxu0 %v1929_v53 }
0x1074   :  { %9856 = vmatmul.mubr.msk.f32.vlgmr.msra.gmra.mrb[22].mxu0 %vm248_vm2, %v2002_v48  ;;  %9863 = vmatprep.subr.mxu0 %v10425_v6 }
0x1075   :  { %9864 = vmatpush3.msra.mxu0 %v2002_v48  ;;  %9865 = vmatprep.mubr.msk.f32.mxu0 %vm10424_vm0, %v10425_v6  ;;  %v3432_v48 = vstv %s9377_s29 }
0x1076   :  { %9873 = vmatprep.subr.mxu0 %v10425_v6 }
0x1147   :  { %v2075_v56 = vpop.f32.mrb[22].mxu0 }
0x1148   :  { %v2079_v57 = vsub.f32 %v10524_v52, %v2075_v56  ;;  %v9857_v58 = vpop.f32.mrb[23].mxu0 }
0x114a   :  { %v2080_v59 = vmul.f32 0.5, %v2079_v57 }
0x114c   :  { %9859 = vmatpush3.msra.mxu1 %v2080_v59  ;;  %9866 = vmatmul.mubr.msk.f32.vlgmr.msra.gmra.mrb[24].mxu0 %vm248_vm2, %v2080_v59 }
0x114d   :  { %9861 = vmatmul.mubr.msk.f32.vlgmr.msra.gmra.mrb[26].mxu1 %vm248_vm2, %v1929_v53  ;;  %9868 = vmatprep.subr.mxu1 %v10425_v6 }
0x114e   :  { %9870 = vmatprep.mubr.msk.f32.mxu1 %vm10424_vm0, %v10425_v6  ;;  %9875 = vmatprep.mubr.msk.f32.mxu0 %vm10424_vm0, %v10425_v6 }
0x121f   :  { %v2223_v60 = vpop.f32.mrb[24].mxu0 }
0x1220   :  { %v2150_v61 = vpop.f32.mrb[26].mxu1  ;;  %v9867_v62 = vpop.f32.mrb[25].mxu0 }
0x1221   :  { %v9862_v63 = vpop.f32.mrb[27].mxu1  ;;  %9869 = vmatpush3.msra.mxu1 %v2150_v61 }
0x1222   :  { %9871 = vmatmul.mubr.msk.f32.vlgmr.msra.gmra.mrb[28].mxu1 %vm248_vm2, %v2223_v60  ;;  %9878 = vmatprep.subr.mxu1 %v10425_v6 }
0x1223   :  { %9879 = vmatpush3.msra.mxu1 %v2223_v60  ;;  %9880 = vmatprep.mubr.msk.f32.mxu1 %vm10424_vm0, %v10425_v6 }
0x1224   :  { %9888 = vmatprep.subr.mxu1 %v10425_v6 }
0x12f5   :  { %v2296_v1 = vpop.f32.mrb[28].mxu1 }
0x12f6   :  { %v2300_v2 = vsub.f32 %v10524_v52, %v2296_v1  ;;  %v9872_v3 = vpop.f32.mrb[29].mxu1 }
0x12f8   :  { %v2301_v5 = vmul.f32 0.5, %v2300_v2 }
0x12fa   :  { %9874 = vmatpush3.msra.mxu0 %v2301_v5  ;;  %9881 = vmatmul.mubr.msk.f32.vlgmr.msra.gmra.mrb[30].mxu1 %vm248_vm2, %v2301_v5 }
0x12fb   :  { %9876 = vmatmul.mubr.msk.f32.vlgmr.msra.gmra.mrb[26].mxu0 %vm248_vm2, %v2150_v61  ;;  %9883 = vmatprep.subr.mxu0 %v10425_v6 }
0x12fc   :  { %9885 = vmatprep.mubr.msk.f32.mxu0 %vm10424_vm0, %v10425_v6  ;;  %9890 = vmatprep.mubr.msk.f32.mxu1 %vm10424_vm0, %v10425_v6 }
0x13cd   :  { %v2444_v7 = vpop.f32.mrb[30].mxu1 }
0x13ce   :  { %v2371_v8 = vpop.f32.mrb[26].mxu0  ;;  %v9882_v9 = vpop.f32.mrb[31].mxu1 }
0x13cf   :  { %v9877_v10 = vpop.f32.mrb[27].mxu0  ;;  %9884 = vmatpush3.msra.mxu0 %v2371_v8 }
0x13d0   :  { %9886 = vmatmul.mubr.msk.f32.vlgmr.msra.gmra.mrb[28].mxu0 %vm248_vm2, %v2444_v7  ;;  %9893 = vmatprep.subr.mxu0 %v10425_v6 }
0x13d1   :  { %9894 = vmatpush3.msra.mxu0 %v2444_v7  ;;  %9895 = vmatprep.mubr.msk.f32.mxu0 %vm10424_vm0, %v10425_v6 }
0x13d2   :  { %9903 = vmatprep.subr.mxu0 %v10425_v6 }
0x14a3   :  { %v2517_v11 = vpop.f32.mrb[28].mxu0 }
0x14a4   :  { %v2521_v12 = vsub.f32 %v10524_v52, %v2517_v11  ;;  %v9887_v13 = vpop.f32.mrb[29].mxu0 }
0x14a6   :  { %v2522_v14 = vmul.f32 0.5, %v2521_v12 }
0x14a8   :  { %9889 = vmatpush3.msra.mxu1 %v2522_v14  ;;  %9896 = vmatmul.mubr.msk.f32.vlgmr.msra.gmra.mrb[30].mxu0 %vm248_vm2, %v2522_v14 }
0x14a9   :  { %9891 = vmatmul.mubr.msk.f32.vlgmr.msra.gmra.mrb[32].mxu1 %vm248_vm2, %v2371_v8  ;;  %9898 = vmatprep.subr.mxu1 %v10425_v6 }
0x14aa   :  { %9900 = vmatprep.mubr.msk.f32.mxu1 %vm10424_vm0, %v10425_v6  ;;  %9905 = vmatprep.mubr.msk.f32.mxu0 %vm10424_vm0, %v10425_v6 }
0x157b   :  { %v2665_v15 = vpop.f32.mrb[30].mxu0 }
0x157c   :  { %v2592_v16 = vpop.f32.mrb[32].mxu1  ;;  %v9897_v17 = vpop.f32.mrb[31].mxu0 }
0x157d   :  { %v9892_v18 = vpop.f32.mrb[33].mxu1  ;;  %9899 = vmatpush3.msra.mxu1 %v2592_v16 }
0x157e   :  { %9901 = vmatmul.mubr.msk.f32.vlgmr.msra.gmra.mrb[34].mxu1 %vm248_vm2, %v2665_v15  ;;  %9908 = vmatprep.subr.mxu1 %v10425_v6 }
0x157f   :  { %9909 = vmatpush3.msra.mxu1 %v2665_v15  ;;  %9910 = vmatprep.mubr.msk.f32.mxu1 %vm10424_vm0, %v10425_v6 }
0x1580   :  { %9918 = vmatprep.subr.mxu1 %v10425_v6 }
0x1651   :  { %v2738_v19 = vpop.f32.mrb[34].mxu1 }
0x1652   :  { %v2742_v21 = vsub.f32 %v10524_v52, %v2738_v19  ;;  %v9902_v22 = vpop.f32.mrb[35].mxu1 }
0x1654   :  { %v2743_v23 = vmul.f32 0.5, %v2742_v21 }
0x1656   :  { %9904 = vmatpush3.msra.mxu0 %v2743_v23  ;;  %9911 = vmatmul.mubr.msk.f32.vlgmr.msra.gmra.mrb[36].mxu1 %vm248_vm2, %v2743_v23 }
0x1657   :  { %9906 = vmatmul.mubr.msk.f32.vlgmr.msra.gmra.mrb[32].mxu0 %vm248_vm2, %v2592_v16  ;;  %9913 = vmatprep.subr.mxu0 %v10425_v6 }
0x1658   :  { %9915 = vmatprep.mubr.msk.f32.mxu0 %vm10424_vm0, %v10425_v6  ;;  %9920 = vmatprep.mubr.msk.f32.mxu1 %vm10424_vm0, %v10425_v6 }
0x1729   :  { %v2886_v28 = vpop.f32.mrb[36].mxu1 }
0x172a   :  { %v2813_v29 = vpop.f32.mrb[32].mxu0  ;;  %v9912_v30 = vpop.f32.mrb[37].mxu1  ;;  %9919 = vmatpush3.msra.mxu1 %v2886_v28 }
0x172b   :  { %v9907_v32 = vpop.f32.mrb[33].mxu0  ;;  %9914 = vmatpush3.msra.mxu0 %v2813_v29  ;;  %10349 = vmatprep.subr.bf16.mxu1 %v10423_v4 }
0x172c   :  { %9916 = vmatmul.mubr.msk.f32.vlgmr.msra.gmra.mrb[34].mxu0 %vm248_vm2, %v2886_v28 }
0x172d   :  { %9925 = vmatprep.mubr.msk.f32.mxu0 %vm248_vm2, %v3050_v31 }
0x17ff   :  { %v2959_v33 = vpop.f32.mrb[34].mxu0 }
0x1800   :  { %v2963_v34 = vsub.f32 %v10524_v52, %v2959_v33  ;;  %v9917_v35 = vpop.f32.mrb[35].mxu0 }
0x1802   :  { %v2964_v36 = vmul.f32 0.5, %v2963_v34 }
0x1804   :  { %9921 = vmatmul.mubr.msk.f32.vlgmr.msra.gmra.mrb[38].mxu1 %vm248_vm2, %v2964_v36 }
0x1805   :  { %9932 = vmatprep.mubr.msk.f32.mxu1 %vm10424_vm0, %v10425_v6  ;;  %10351 = vmatpush3.bf16.msra.mxu1 %v10350_v38 }
0x1806   :  { %10352 = vmatprep.subr.bf16.mxu1 %v10423_v4 }
0x18d7   :  { %v3034_v0 = vpop.f32.mrb[38].mxu1 }
0x18d8   :  { %v9922_v20 = vpop.f32.mrb[39].mxu1  ;;  %9923 = vmatprep.subr.mxu0 %v3034_v0 }
0x18d9   :  { %9924 = vmatpush3.msra.mxu0 %v3034_v0 }
0x18da   :  { %9926 = vmatmul.mubr.msk.f32.vlgmr.msra.gmra.mrb[36].mxu0 %vm248_vm2, %v10516_v50 }
0x19ad   :  { %v9927_v39 = vpop.f32.mrb[36].mxu0 }
0x19ae   :  { %v3124_v40 = vpop.f32.mrb[37].mxu0 }
0x19af   :  { %v10353_v41 = vpack.c.bf16 %v9927_v39, %v3124_v40  ;;  %3137 = vxpose.xlu0.b32.start [1/2] (short) (narrow) %v3124_v40, 8  ;;  %9944 = vmatprep.mubr.msk.f32.mxu0 %vm248_vm2, %v3124_v40 }
0x19b3   :  { %3138 = vxpose.xlu0.b32.end [2/2] (short) (narrow) %v9927_v39, 8 }
0x19b7   :  { %3242 = vxpose.xlu0.b32.start [1/2] (short) (narrow) %v9375_v49, 8 }
0x19bb   :  { %3243 = vxpose.xlu0.b32.end [2/2] (short) (narrow) %v9376_v37, 8 }
0x1a2f   :  { %v3153_v50 = vpop.trf.xlu0 }
0x1a30   :  { %9933 = vmatmul.mubr.msk.f32.vlgmr.msra.gmra.mrb[40].mxu1 %vm69_vm1, %v3153_v50 }
0x1a31   :  { %10354 = vmatpush3.bf16.msra.mxu1 %v10353_v41  ;;  %9939 = vmatprep.mubr.msk.f32.mxu1 %vm10424_vm0, %v10425_v6 }
0x1a32   :  { %9954 = vmatprep.subr.mxu1 %v10425_v6 }
0x1a37   :  { %v3258_v42 = vpop.trf.xlu0 }
0x1a38   :  { %9940 = vmatmul.mubr.msk.f32.vlgmr.msra.gmra.mrb[40].mxu1 %vm69_vm1, %v3258_v42 }
0x1a39   :  { %9956 = vmatprep.mubr.msk.f32.mxu1 %vm10424_vm0, %v10425_v6 }
0x1b0b   :  { %v3343_v43 = vpop.f32.mrb[40].mxu1 }
0x1b0c   :  { %v9941_v44 = vpop.f32.mrb[41].mxu1  ;;  %9942 = vmatprep.subr.mxu0 %v3343_v43 }
0x1b0d   :  { %9943 = vmatpush3.msra.mxu0 %v3343_v43 }
0x1b0e   :  { %9945 = vmatmul.mubr.msk.f32.vlgmr.msra.gmra.mrb[38].mxu0 %vm248_vm2, %v9927_v39  ;;  %10355 = vmatprep.subr.bf16.mxu0 %v10423_v4 }
0x1b0f   :  { %9951 = vmatprep.mubr.msk.f32.mxu0 %vm10424_vm0, %v10425_v6 }
0x1be1   :  { %v9946_v45 = vpop.f32.mrb[38].mxu0 }
0x1be2   :  { %v3429_v46 = vmul.f32 0.5, %v9946_v45  ;;  %v3419_v47 = vpop.f32.mrb[39].mxu0 }
0x1be3   :  { %v3428_v53 = vmul.f32 0.5, %v3419_v47 }
0x1be4   :  { %v3431_v54 = vsub.f32 %v9376_v37, %v3429_v46 }
0x1be5   :  { %v3430_v55 = vsub.f32 %v9375_v49, %v3428_v53 }
0x1be6   :  { %v3434_v56 = vmul.f32 %v3432_v48, %v3431_v54 }
0x1be7   :  { %v3433_v57 = vmul.f32 %v3432_v48, %v3430_v55 }
0x1be8   :  { %v6134_v58 = vadd.f32 %v9927_v39, %v3434_v56 }
0x1be9   :  { %3435 = vxpose.xlu0.b32.start [1/2] (short) (narrow) %v3433_v57, 8  ;;  %v10356_v59 = vpack.c.bf16 %v3434_v56, %v3433_v57  ;;  %v10696_v60 = vadd.f32 %v3433_v57, %v3124_v40 }
0x1beb   :  { %10357 = vmatpush3.bf16.msra.mxu0 %v10356_v59 }
0x1bec   :  { %9959 = vmatprep.subr.mxu0 %v10425_v6 }
0x1bed   :  { %3436 = vxpose.xlu0.b32.end [2/2] (short) (narrow) %v3434_v56, 8 }
0x1c69   :  { %v3451_v61 = vpop.trf.xlu0 }
0x1c6a   :  { %9952 = vmatmul.mubr.msk.f32.vlgmr.msra.gmra.mrb[40].mxu0 %vm69_vm1, %v3451_v61 }
0x1c6b   :  { %9961 = vmatprep.mubr.msk.f32.mxu0 %vm10424_vm0, %v10425_v6 }
0x1d3d   :  { %v3536_v62 = vpop.f32.mrb[40].mxu0 }
0x1d3e   :  { %v3540_v63 = vadd.f32 %v3536_v62, %v10501_v26  ;;  %v9953_v1 = vpop.f32.mrb[41].mxu0 }
0x1d40   :  { %v3541_v2 = vmul.f32 %v3540_v63, %v3540_v63 }
0x1d42   :  { %v3542_v3 = vsel %vm248_vm2, %v3541_v2, 0.0 }
0x1d43   :  { %3543 = vadd.xlane.f32.xlu0 %v3542_v3 }
0x1dd0   :  { %v3544_v5 = vpop.xlane.xlu0 %3543 }
0x1dd1   :  { %v3545_v7 = vrot.slane %v3544_v5, 4 }
0x1dd3   :  { %v3546_v8 = vadd.f32 %v3545_v7, %v3544_v5 }
0x1dd5   :  { %v3547_v9 = vrot.slane %v3546_v8, 2 }
0x1dd7   :  { %v3548_v10 = vadd.f32 %v3547_v9, %v3546_v8 }
0x1dd9   :  { %v3549_v11 = vrot.slane %v3548_v10, 1 }
0x1ddb   :  { %v3550_v12 = vadd.f32 %v3549_v11, %v3548_v10 }
0x1ddd   :  { %10379 = vpush %v3550_v12 }
0x1e0e   :  { %s10380_s30 = spop %10379 }
0x1e0f   :  { %v3552_v13 = vstv %s10380_s30 }
0x1e10   :  { %10400 = vrsqrt.f32 %v3552_v13 }
0x1e1a   :  { %v10401_v14 = vpop.eup %10400 }
0x1e1b   :  { %10381 = vpush %v10401_v14 }
0x1e4c   :  { %s10382_s3 = spop %10381 }
0x1e4d   :  { %v3555_v15 = vstv %s10382_s3 }
0x1e4e   :  { %10402 = vrsqrt.f32 %v3555_v15  ;;  %v3556_v16 = vmul.f32 %v3555_v15, %v3540_v63  ;;  %vm6138_vm6 = vcmp.eq.f32.partialorder %v3555_v15, inf  ;;  %v6141_v19 = vand.u32 2147483648, %v3555_v15 }
0x1e4f   :  { %vm6140_vm7 = vcmp.eq.f32.partialorder %v3555_v15, 0.0 }
0x1e50   :  { %9955 = vmatpush3.msra.mxu1 %v3556_v16 }
0x1e51   :  { %9957 = vmatmul.mubr.msk.f32.vlgmr.msra.gmra.mrb[42].mxu1 %vm248_vm2, %v10501_v26  ;;  %9964 = vmatprep.subr.mxu1 %v10425_v6 }
0x1e52   :  { %9965 = vmatpush3.msk.msra.mxu1 %vm28_vm3, %v10426_v51  ;;  %9966 = vmatprep.mubr.msk.f32.mxu1 %vm10424_vm0, %v10425_v6 }
0x1e53   :  { %9974 = vmatprep.subr.mxu1 %v10425_v6 }
0x1e58   :  { %v10403_v17 = vpop.eup %10402 }
0x1e59   :  { %v6137_v18 = vmul.f32 %v10403_v17, %v3555_v15 }
0x1e5b   :  { %v6139_v21 = vsel %vm6138_vm6, %v3555_v15, %v6137_v18 }
0x1e5c   :  { %v6142_v22 = vsel %vm6140_vm7, %v6141_v19, %v6139_v21 }
0x1e5d   :  { %10383 = vpush %v6142_v22 }
0x1e8e   :  { %s10714_s4 = spop %10383 }
0x1e8f   :  { %v6144_v23 = vstv %s10714_s4 }
0x1e90   :  { %v10719_v27 = vmul.f32 %v6144_v23, %v6134_v58 }
0x1f24   :  { %v3623_v28 = vpop.f32.mrb[42].mxu1 }
0x1f25   :  { %v3627_v29 = vsub.f32 %v10524_v52, %v3623_v28  ;;  %v9958_v30 = vpop.f32.mrb[43].mxu1 }
0x1f27   :  { %v3628_v31 = vmul.f32 0.5, %v3627_v29 }
0x1f29   :  { %9960 = vmatpush3.msra.mxu0 %v3628_v31  ;;  %9967 = vmatmul.mubr.msk.f32.vlgmr.msra.gmra.mrb[44].mxu1 %vm248_vm2, %v3628_v31 }
0x1f2a   :  { %9962 = vmatmul.mubr.msk.f32.vlgmr.msra.gmra.mrb[42].mxu0 %vm248_vm2, %v3556_v16  ;;  %9969 = vmatprep.subr.mxu0 %v10425_v6 }
0x1f2b   :  { %9971 = vmatprep.mubr.msk.f32.mxu0 %vm10424_vm0, %v10425_v6  ;;  %9976 = vmatprep.mubr.msk.f32.mxu1 %vm10424_vm0, %v10425_v6 }
0x1ffc   :  { %v3771_v32 = vpop.f32.mrb[44].mxu1 }
0x1ffd   :  { %v3698_v33 = vpop.f32.mrb[42].mxu0  ;;  %v9968_v34 = vpop.f32.mrb[45].mxu1 }
0x1ffe   :  { %v9963_v35 = vpop.f32.mrb[43].mxu0  ;;  %9970 = vmatpush3.msra.mxu0 %v3698_v33 }
0x1fff   :  { %9972 = vmatmul.mubr.msk.f32.vlgmr.msra.gmra.mrb[44].mxu0 %vm248_vm2, %v3771_v32  ;;  %9979 = vmatprep.subr.mxu0 %v10425_v6 }
0x2000   :  { %9980 = vmatpush3.msra.mxu0 %v3771_v32  ;;  %9981 = vmatprep.mubr.msk.f32.mxu0 %vm10424_vm0, %v10425_v6 }
0x2001   :  { %9989 = vmatprep.subr.mxu0 %v10425_v6 }
0x20d2   :  { %v3844_v36 = vpop.f32.mrb[44].mxu0 }
0x20d3   :  { %v3848_v0 = vsub.f32 %v10524_v52, %v3844_v36  ;;  %v9973_v20 = vpop.f32.mrb[45].mxu0 }
0x20d5   :  { %v3849_v49 = vmul.f32 0.5, %v3848_v0 }
0x20d7   :  { %9975 = vmatpush3.msra.mxu1 %v3849_v49  ;;  %9982 = vmatmul.mubr.msk.f32.vlgmr.msra.gmra.mrb[46].mxu0 %vm248_vm2, %v3849_v49 }
0x20d8   :  { %9977 = vmatmul.mubr.msk.f32.vlgmr.msra.gmra.mrb[46].mxu1 %vm248_vm2, %v3698_v33  ;;  %9984 = vmatprep.subr.mxu1 %v10425_v6 }
0x20d9   :  { %9986 = vmatprep.mubr.msk.f32.mxu1 %vm10424_vm0, %v10425_v6  ;;  %9991 = vmatprep.mubr.msk.f32.mxu0 %vm10424_vm0, %v10425_v6 }
0x21aa   :  { %v3992_v37 = vpop.f32.mrb[46].mxu0 }
0x21ab   :  { %v3919_v38 = vpop.f32.mrb[46].mxu1  ;;  %v9983_v39 = vpop.f32.mrb[47].mxu0 }
0x21ac   :  { %v9978_v40 = vpop.f32.mrb[47].mxu1  ;;  %9985 = vmatpush3.msra.mxu1 %v3919_v38 }
0x21ad   :  { %9987 = vmatmul.mubr.msk.f32.vlgmr.msra.gmra.mrb[48].mxu1 %vm248_vm2, %v3992_v37  ;;  %9994 = vmatprep.subr.mxu1 %v10425_v6 }
0x21ae   :  { %9995 = vmatpush3.msra.mxu1 %v3992_v37  ;;  %9996 = vmatprep.mubr.msk.f32.mxu1 %vm10424_vm0, %v10425_v6 }
0x21af   :  { %10004 = vmatprep.subr.mxu1 %v10425_v6 }
0x2280   :  { %v4065_v41 = vpop.f32.mrb[48].mxu1 }
0x2281   :  { %v4069_v50 = vsub.f32 %v10524_v52, %v4065_v41  ;;  %v9988_v42 = vpop.f32.mrb[49].mxu1 }
0x2283   :  { %v4070_v43 = vmul.f32 0.5, %v4069_v50 }
0x2285   :  { %9990 = vmatpush3.msra.mxu0 %v4070_v43  ;;  %9997 = vmatmul.mubr.msk.f32.vlgmr.msra.gmra.mrb[50].mxu1 %vm248_vm2, %v4070_v43 }
0x2286   :  { %9992 = vmatmul.mubr.msk.f32.vlgmr.msra.gmra.mrb[48].mxu0 %vm248_vm2, %v3919_v38  ;;  %9999 = vmatprep.subr.mxu0 %v10425_v6 }
0x2287   :  { %10001 = vmatprep.mubr.msk.f32.mxu0 %vm10424_vm0, %v10425_v6  ;;  %10006 = vmatprep.mubr.msk.f32.mxu1 %vm10424_vm0, %v10425_v6 }
0x2358   :  { %v4213_v44 = vpop.f32.mrb[50].mxu1 }
0x2359   :  { %v4140_v45 = vpop.f32.mrb[48].mxu0  ;;  %v9998_v46 = vpop.f32.mrb[51].mxu1 }
0x235a   :  { %v9993_v47 = vpop.f32.mrb[49].mxu0  ;;  %10000 = vmatpush3.msra.mxu0 %v4140_v45 }
0x235b   :  { %10002 = vmatmul.mubr.msk.f32.vlgmr.msra.gmra.mrb[50].mxu0 %vm248_vm2, %v4213_v44  ;;  %10009 = vmatprep.subr.mxu0 %v10425_v6 }
0x235c   :  { %10010 = vmatpush3.msra.mxu0 %v4213_v44  ;;  %10011 = vmatprep.mubr.msk.f32.mxu0 %vm10424_vm0, %v10425_v6 }
0x235d   :  { %10019 = vmatprep.subr.mxu0 %v10425_v6 }
0x242e   :  { %v4286_v48 = vpop.f32.mrb[50].mxu0 }
0x242f   :  { %v4290_v53 = vsub.f32 %v10524_v52, %v4286_v48  ;;  %v10003_v54 = vpop.f32.mrb[51].mxu0 }
0x2431   :  { %v4291_v55 = vmul.f32 0.5, %v4290_v53 }
0x2433   :  { %10005 = vmatpush3.msra.mxu1 %v4291_v55  ;;  %10012 = vmatmul.mubr.msk.f32.vlgmr.msra.gmra.mrb[52].mxu0 %vm248_vm2, %v4291_v55 }
0x2434   :  { %10007 = vmatmul.mubr.msk.f32.vlgmr.msra.gmra.mrb[52].mxu1 %vm248_vm2, %v4140_v45  ;;  %10014 = vmatprep.subr.mxu1 %v10425_v6 }
0x2435   :  { %10016 = vmatprep.mubr.msk.f32.mxu1 %vm10424_vm0, %v10425_v6  ;;  %10021 = vmatprep.mubr.msk.f32.mxu0 %vm10424_vm0, %v10425_v6 }
0x2506   :  { %v4434_v56 = vpop.f32.mrb[52].mxu0 }
0x2507   :  { %v4361_v57 = vpop.f32.mrb[52].mxu1  ;;  %v10013_v58 = vpop.f32.mrb[53].mxu0 }
0x2508   :  { %v10008_v59 = vpop.f32.mrb[53].mxu1  ;;  %10015 = vmatpush3.msra.mxu1 %v4361_v57 }
0x2509   :  { %10017 = vmatmul.mubr.msk.f32.vlgmr.msra.gmra.mrb[54].mxu1 %vm248_vm2, %v4434_v56  ;;  %10024 = vmatprep.subr.mxu1 %v10425_v6 }
0x250a   :  { %10025 = vmatpush3.msra.mxu1 %v4434_v56  ;;  %10026 = vmatprep.mubr.msk.f32.mxu1 %vm10424_vm0, %v10425_v6 }
0x250b   :  { %10034 = vmatprep.subr.mxu1 %v10425_v6 }
0x25dc   :  { %v4507_v61 = vpop.f32.mrb[54].mxu1 }
0x25dd   :  { %v4511_v62 = vsub.f32 %v10524_v52, %v4507_v61  ;;  %v10018_v63 = vpop.f32.mrb[55].mxu1 }
0x25df   :  { %v4512_v1 = vmul.f32 0.5, %v4511_v62  ;;  %v6145_v62 = vmul.f32 %v6144_v23, %v10696_v60  ;;  %v9421_v23 = vld [vmem:[%s11071_s1 + $0x30] sm:$0xff] }
0x25e0   :  { %6337 = vxpose.xlu0.b32.start [1/2] (short) (narrow) %v9421_v23, 8 }
0x25e1   :  { %10020 = vmatpush3.msra.mxu0 %v4512_v1  ;;  %10027 = vmatmul.mubr.msk.f32.vlgmr.msra.gmra.mrb[56].mxu1 %vm248_vm2, %v4512_v1 }
0x25e2   :  { %10022 = vmatmul.mubr.msk.f32.vlgmr.msra.gmra.mrb[54].mxu0 %vm248_vm2, %v4361_v57  ;;  %10029 = vmatprep.subr.mxu0 %v10425_v6 }
0x25e3   :  { %10031 = vmatprep.mubr.msk.f32.mxu0 %vm10424_vm0, %v10425_v6  ;;  %10036 = vmatprep.mubr.msk.f32.mxu1 %vm10424_vm0, %v10425_v6 }
0x26b4   :  { %v4655_v2 = vpop.f32.mrb[56].mxu1 }
0x26b5   :  { %v4582_v3 = vpop.f32.mrb[54].mxu0  ;;  %v10028_v5 = vpop.f32.mrb[57].mxu1 }
0x26b6   :  { %v10023_v7 = vpop.f32.mrb[55].mxu0  ;;  %10030 = vmatpush3.msra.mxu0 %v4582_v3 }
0x26b7   :  { %10032 = vmatmul.mubr.msk.f32.vlgmr.msra.gmra.mrb[56].mxu0 %vm248_vm2, %v4655_v2  ;;  %10039 = vmatprep.subr.mxu0 %v10425_v6 }
0x26b8   :  { %10040 = vmatpush3.msra.mxu0 %v4655_v2  ;;  %10041 = vmatprep.mubr.msk.f32.mxu0 %vm10424_vm0, %v10425_v6 }
0x26b9   :  { %10049 = vmatprep.subr.mxu0 %v10425_v6 }
0x278a   :  { %v4728_v8 = vpop.f32.mrb[56].mxu0 }
0x278b   :  { %v4732_v9 = vsub.f32 %v10524_v52, %v4728_v8  ;;  %v10033_v10 = vpop.f32.mrb[57].mxu0  ;;  %v9422_v8 = vld [vmem:[%s11071_s1 + $0x38] sm:$0xff]  ;;  %s9423_s1 = sld [smem:[#allocation2 + $0x3]] }
0x278c   :  { %6338 = vxpose.xlu0.b32.end [2/2] (short) (narrow) %v9422_v8, 8 }
0x278d   :  { %v4733_v11 = vmul.f32 0.5, %v4732_v9  ;;  %v10359_v9 = vpack.c.bf16 %v9422_v8, %v9421_v23 }
0x278f   :  { %10035 = vmatpush3.msra.mxu1 %v4733_v11  ;;  %10042 = vmatmul.mubr.msk.f32.vlgmr.msra.gmra.mrb[58].mxu0 %vm248_vm2, %v4733_v11 }
0x2790   :  { %10037 = vmatmul.mubr.msk.f32.vlgmr.msra.gmra.mrb[58].mxu1 %vm248_vm2, %v4582_v3  ;;  %10044 = vmatprep.subr.mxu1 %v10425_v6 }
0x2791   :  { %10046 = vmatprep.mubr.msk.f32.mxu1 %vm10424_vm0, %v10425_v6  ;;  %10051 = vmatprep.mubr.msk.f32.mxu0 %vm10424_vm0, %v10425_v6 }
0x2862   :  { %v4876_v12 = vpop.f32.mrb[58].mxu0 }
0x2863   :  { %v4803_v13 = vpop.f32.mrb[58].mxu1  ;;  %v10043_v14 = vpop.f32.mrb[59].mxu0 }
0x2864   :  { %v10038_v15 = vpop.f32.mrb[59].mxu1  ;;  %10045 = vmatpush3.msra.mxu1 %v4803_v13 }
0x2865   :  { %10047 = vmatmul.mubr.msk.f32.vlgmr.msra.gmra.mrb[60].mxu1 %vm248_vm2, %v4876_v12  ;;  %10054 = vmatprep.subr.mxu1 %v10425_v6 }
0x2866   :  { %10055 = vmatpush3.msra.mxu1 %v4876_v12  ;;  %10056 = vmatprep.mubr.msk.f32.mxu1 %vm10424_vm0, %v10425_v6 }
0x2867   :  { %10064 = vmatprep.subr.mxu1 %v10425_v6 }
0x2938   :  { %v4949_v16 = vpop.f32.mrb[60].mxu1 }
0x2939   :  { %v4953_v17 = vsub.f32 %v10524_v52, %v4949_v16  ;;  %v10048_v18 = vpop.f32.mrb[61].mxu1 }
0x293b   :  { %v4954_v19 = vmul.f32 0.5, %v4953_v17 }
0x293d   :  { %10050 = vmatpush3.msra.mxu0 %v4954_v19  ;;  %10057 = vmatmul.mubr.msk.f32.vlgmr.msra.gmra.mrb[62].mxu1 %vm248_vm2, %v4954_v19  ;;  %v6527_v19 = vstv %s9423_s1 }
0x293e   :  { %10052 = vmatmul.mubr.msk.f32.vlgmr.msra.gmra.mrb[60].mxu0 %vm248_vm2, %v4803_v13  ;;  %10059 = vmatprep.subr.mxu0 %v10425_v6  ;;  %v6353_v13 = vpop.trf.xlu0 }
0x293f   :  { %10061 = vmatprep.mubr.msk.f32.mxu0 %vm10424_vm0, %v10425_v6  ;;  %10066 = vmatprep.mubr.msk.f32.mxu1 %vm10424_vm0, %v10425_v6 }
0x2a10   :  { %v5097_v21 = vpop.f32.mrb[62].mxu1 }
0x2a11   :  { %v5024_v22 = vpop.f32.mrb[60].mxu0  ;;  %v10058_v28 = vpop.f32.mrb[63].mxu1 }
0x2a12   :  { %v10053_v29 = vpop.f32.mrb[61].mxu0  ;;  %10060 = vmatpush3.msra.mxu0 %v5024_v22 }
0x2a13   :  { %10062 = vmatmul.mubr.msk.f32.vlgmr.msra.gmra.mrb[62].mxu0 %vm248_vm2, %v5097_v21  ;;  %10069 = vmatprep.subr.mxu0 %v10425_v6 }
0x2a14   :  { %10070 = vmatpush3.msra.mxu0 %v5097_v21  ;;  %10071 = vmatprep.mubr.msk.f32.mxu0 %vm10424_vm0, %v10425_v6 }
0x2a15   :  { %10079 = vmatprep.subr.mxu0 %v10425_v6 }
0x2ae6   :  { %v5170_v30 = vpop.f32.mrb[62].mxu0 }
0x2ae7   :  { %v5174_v31 = vsub.f32 %v10524_v52, %v5170_v30  ;;  %v10063_v32 = vpop.f32.mrb[63].mxu0 }
0x2ae9   :  { %v5175_v33 = vmul.f32 0.5, %v5174_v31 }
0x2aeb   :  { %10065 = vmatpush3.msra.mxu1 %v5175_v33  ;;  %10072 = vmatmul.mubr.msk.f32.vlgmr.msra.gmra.mrb[64].mxu0 %vm248_vm2, %v5175_v33 }
0x2aec   :  { %10067 = vmatmul.mubr.msk.f32.vlgmr.msra.gmra.mrb[64].mxu1 %vm248_vm2, %v5024_v22  ;;  %10074 = vmatprep.subr.mxu1 %v10425_v6 }
0x2aed   :  { %10076 = vmatprep.mubr.msk.f32.mxu1 %vm10424_vm0, %v10425_v6  ;;  %10081 = vmatprep.mubr.msk.f32.mxu0 %vm10424_vm0, %v10425_v6 }
0x2bbe   :  { %v5318_v34 = vpop.f32.mrb[64].mxu0 }
0x2bbf   :  { %v5245_v35 = vpop.f32.mrb[64].mxu1  ;;  %v10073_v36 = vpop.f32.mrb[65].mxu0 }
0x2bc0   :  { %v10068_v0 = vpop.f32.mrb[65].mxu1  ;;  %10075 = vmatpush3.msra.mxu1 %v5245_v35 }
0x2bc1   :  { %10077 = vmatmul.mubr.msk.f32.vlgmr.msra.gmra.mrb[66].mxu1 %vm248_vm2, %v5318_v34  ;;  %10084 = vmatprep.subr.mxu1 %v10425_v6 }
0x2bc2   :  { %10085 = vmatpush3.msra.mxu1 %v5318_v34  ;;  %10086 = vmatprep.mubr.msk.f32.mxu1 %vm10424_vm0, %v10425_v6 }
0x2bc3   :  { %10094 = vmatprep.subr.mxu1 %v10425_v6 }
0x2c94   :  { %v5391_v20 = vpop.f32.mrb[66].mxu1 }
0x2c95   :  { %v5395_v49 = vsub.f32 %v10524_v52, %v5391_v20  ;;  %v10078_v37 = vpop.f32.mrb[67].mxu1 }
0x2c97   :  { %v5396_v38 = vmul.f32 0.5, %v5395_v49 }
0x2c99   :  { %10080 = vmatpush3.msra.mxu0 %v5396_v38  ;;  %10087 = vmatmul.mubr.msk.f32.vlgmr.msra.gmra.mrb[68].mxu1 %vm248_vm2, %v5396_v38 }
0x2c9a   :  { %10082 = vmatmul.mubr.msk.f32.vlgmr.msra.gmra.mrb[66].mxu0 %vm248_vm2, %v5245_v35  ;;  %10089 = vmatprep.subr.mxu0 %v10425_v6 }
0x2c9b   :  { %10091 = vmatprep.mubr.msk.f32.mxu0 %vm10424_vm0, %v10425_v6  ;;  %10096 = vmatprep.mubr.msk.f32.mxu1 %vm10424_vm0, %v10425_v6 }
0x2d6c   :  { %v5539_v39 = vpop.f32.mrb[68].mxu1 }
0x2d6d   :  { %v5466_v40 = vpop.f32.mrb[66].mxu0  ;;  %v10088_v41 = vpop.f32.mrb[69].mxu1 }
0x2d6e   :  { %v10083_v50 = vpop.f32.mrb[67].mxu0  ;;  %10090 = vmatpush3.msra.mxu0 %v5466_v40 }
0x2d6f   :  { %10092 = vmatmul.mubr.msk.f32.vlgmr.msra.gmra.mrb[68].mxu0 %vm248_vm2, %v5539_v39  ;;  %10099 = vmatprep.subr.mxu0 %v10425_v6 }
0x2d70   :  { %10100 = vmatpush3.msra.mxu0 %v5539_v39  ;;  %10101 = vmatprep.mubr.msk.f32.mxu0 %vm10424_vm0, %v10425_v6 }
0x2d71   :  { %10109 = vmatprep.subr.mxu0 %v10425_v6 }
0x2e42   :  { %v5612_v42 = vpop.f32.mrb[68].mxu0 }
0x2e43   :  { %v5616_v43 = vsub.f32 %v10524_v52, %v5612_v42  ;;  %v10093_v44 = vpop.f32.mrb[69].mxu0 }
0x2e45   :  { %v5617_v45 = vmul.f32 0.5, %v5616_v43 }
0x2e47   :  { %10095 = vmatpush3.msra.mxu1 %v5617_v45  ;;  %10102 = vmatmul.mubr.msk.f32.vlgmr.msra.gmra.mrb[70].mxu0 %vm248_vm2, %v5617_v45 }
0x2e48   :  { %10097 = vmatmul.mubr.msk.f32.vlgmr.msra.gmra.mrb[70].mxu1 %vm248_vm2, %v5466_v40  ;;  %10104 = vmatprep.subr.mxu1 %v10425_v6 }
0x2e49   :  { %10106 = vmatprep.mubr.msk.f32.mxu1 %vm10424_vm0, %v10425_v6  ;;  %10111 = vmatprep.mubr.msk.f32.mxu0 %vm10424_vm0, %v10425_v6 }
0x2f1a   :  { %v5760_v46 = vpop.f32.mrb[70].mxu0 }
0x2f1b   :  { %v5687_v47 = vpop.f32.mrb[70].mxu1  ;;  %v10103_v48 = vpop.f32.mrb[71].mxu0 }
0x2f1c   :  { %v10098_v53 = vpop.f32.mrb[71].mxu1  ;;  %10105 = vmatpush3.msra.mxu1 %v5687_v47 }
0x2f1d   :  { %10107 = vmatmul.mubr.msk.f32.vlgmr.msra.gmra.mrb[72].mxu1 %vm248_vm2, %v5760_v46  ;;  %10114 = vmatprep.subr.mxu1 %v10425_v6 }
0x2f1e   :  { %10115 = vmatpush3.msra.mxu1 %v5760_v46  ;;  %10116 = vmatprep.mubr.msk.f32.mxu1 %vm10424_vm0, %v10425_v6 }
0x2f1f   :  { %10124 = vmatprep.subr.mxu1 %v10425_v6 }
0x2ff0   :  { %v5833_v54 = vpop.f32.mrb[72].mxu1 }
0x2ff1   :  { %v5837_v55 = vsub.f32 %v10524_v52, %v5833_v54  ;;  %v10108_v56 = vpop.f32.mrb[73].mxu1 }
0x2ff3   :  { %v5838_v57 = vmul.f32 0.5, %v5837_v55 }
0x2ff5   :  { %10110 = vmatpush3.msra.mxu0 %v5838_v57  ;;  %10117 = vmatmul.mubr.msk.f32.vlgmr.msra.gmra.mrb[74].mxu1 %vm248_vm2, %v5838_v57 }
0x2ff6   :  { %10112 = vmatmul.mubr.msk.f32.vlgmr.msra.gmra.mrb[72].mxu0 %vm248_vm2, %v5687_v47  ;;  %10119 = vmatprep.subr.mxu0 %v10425_v6 }
0x2ff7   :  { %10121 = vmatprep.mubr.msk.f32.mxu0 %vm10424_vm0, %v10425_v6  ;;  %10126 = vmatprep.mubr.msk.f32.mxu1 %vm10424_vm0, %v10425_v6 }
0x30c8   :  { %v5981_v58 = vpop.f32.mrb[74].mxu1 }
0x30c9   :  { %v5908_v59 = vpop.f32.mrb[72].mxu0  ;;  %v10118_v61 = vpop.f32.mrb[75].mxu1  ;;  %10125 = vmatpush3.msra.mxu1 %v5981_v58 }
0x30ca   :  { %v10113_v63 = vpop.f32.mrb[73].mxu0  ;;  %10120 = vmatpush3.msra.mxu0 %v5908_v59  ;;  %10358 = vmatprep.subr.bf16.mxu1 %v10423_v4 }
0x30cb   :  { %10122 = vmatmul.mubr.msk.f32.vlgmr.msra.gmra.mrb[74].mxu0 %vm248_vm2, %v5981_v58 }
0x30cc   :  { %10131 = vmatprep.mubr.msk.f32.mxu0 %vm248_vm2, %v6145_v62 }
0x319e   :  { %v6054_v1 = vpop.f32.mrb[74].mxu0 }
0x319f   :  { %v6058_v2 = vsub.f32 %v10524_v52, %v6054_v1  ;;  %v10123_v3 = vpop.f32.mrb[75].mxu0 }
0x31a1   :  { %v6059_v5 = vmul.f32 0.5, %v6058_v2 }
0x31a3   :  { %10127 = vmatmul.mubr.msk.f32.vlgmr.msra.gmra.mrb[76].mxu1 %vm248_vm2, %v6059_v5 }
0x31a4   :  { %10138 = vmatprep.mubr.msk.f32.mxu1 %vm10424_vm0, %v10425_v6  ;;  %10360 = vmatpush3.bf16.msra.mxu1 %v10359_v9 }
0x31a5   :  { %10361 = vmatprep.subr.bf16.mxu1 %v10423_v4 }
0x3276   :  { %v6129_v7 = vpop.f32.mrb[76].mxu1 }
0x3277   :  { %v10128_v60 = vpop.f32.mrb[77].mxu1  ;;  %10129 = vmatprep.subr.mxu0 %v6129_v7 }
0x3278   :  { %10130 = vmatpush3.msra.mxu0 %v6129_v7 }
0x3279   :  { %10132 = vmatmul.mubr.msk.f32.vlgmr.msra.gmra.mrb[76].mxu0 %vm248_vm2, %v10719_v27 }
0x334c   :  { %v10133_v10 = vpop.f32.mrb[76].mxu0 }
0x334d   :  { %v6219_v11 = vpop.f32.mrb[77].mxu0 }
0x334e   :  { %v10362_v12 = vpack.c.bf16 %v10133_v10, %v6219_v11  ;;  %6232 = vxpose.xlu1.b32.start [1/2] (short) (narrow) %v6219_v11, 8  ;;  %10150 = vmatprep.mubr.msk.f32.mxu0 %vm248_vm2, %v6219_v11 }
0x3352   :  { %6233 = vxpose.xlu1.b32.end [2/2] (short) (narrow) %v10133_v10, 8 }
0x33ce   :  { %v6248_v27 = vpop.trf.xlu1 }
0x33cf   :  { %10139 = vmatmul.mubr.msk.f32.vlgmr.msra.gmra.mrb[78].mxu1 %vm69_vm1, %v6248_v27 }
0x33d0   :  { %10363 = vmatpush3.bf16.msra.mxu1 %v10362_v12  ;;  %10145 = vmatprep.mubr.msk.f32.mxu1 %vm10424_vm0, %v10425_v6 }
0x33d1   :  { %10160 = vmatprep.subr.mxu1 %v10425_v6 }
0x33d7   :  { %10146 = vmatmul.mubr.msk.f32.vlgmr.msra.gmra.mrb[78].mxu1 %vm69_vm1, %v6353_v13 }
0x33d8   :  { %10162 = vmatprep.mubr.msk.f32.mxu1 %vm10424_vm0, %v10425_v6 }
0x34aa   :  { %v6438_v14 = vpop.f32.mrb[78].mxu1 }
0x34ab   :  { %v10147_v15 = vpop.f32.mrb[79].mxu1  ;;  %10148 = vmatprep.subr.mxu0 %v6438_v14 }
0x34ac   :  { %10149 = vmatpush3.msra.mxu0 %v6438_v14 }
0x34ad   :  { %10151 = vmatmul.mubr.msk.f32.vlgmr.msra.gmra.mrb[78].mxu0 %vm248_vm2, %v10133_v10  ;;  %10364 = vmatprep.subr.bf16.mxu0 %v10423_v4 }
0x34ae   :  { %10157 = vmatprep.mubr.msk.f32.mxu0 %vm10424_vm0, %v10425_v6 }
0x3580   :  { %v10152_v16 = vpop.f32.mrb[78].mxu0 }
0x3581   :  { %v6524_v17 = vmul.f32 0.5, %v10152_v16  ;;  %v6514_v18 = vpop.f32.mrb[79].mxu0 }
0x3582   :  { %v6523_v21 = vmul.f32 0.5, %v6514_v18 }
0x3583   :  { %v6526_v22 = vsub.f32 %v9422_v8, %v6524_v17 }
0x3584   :  { %v6525_v28 = vsub.f32 %v9421_v23, %v6523_v21 }
0x3585   :  { %v6529_v29 = vmul.f32 %v6527_v19, %v6526_v22 }
0x3586   :  { %v6528_v30 = vmul.f32 %v6527_v19, %v6525_v28 }
0x3587   :  { %v9229_v31 = vadd.f32 %v10133_v10, %v6529_v29 }
0x3588   :  { %6530 = vxpose.xlu1.b32.start [1/2] (short) (narrow) %v6528_v30, 8  ;;  %v10365_v32 = vpack.c.bf16 %v6529_v29, %v6528_v30  ;;  %v10890_v33 = vadd.f32 %v6528_v30, %v6219_v11 }
0x358a   :  { %10366 = vmatpush3.bf16.msra.mxu0 %v10365_v32 }
0x358b   :  { %10165 = vmatprep.subr.mxu0 %v10425_v6 }
0x358c   :  { %6531 = vxpose.xlu1.b32.end [2/2] (short) (narrow) %v6529_v29, 8 }
0x3608   :  { %v6546_v4 = vpop.trf.xlu1 }
0x3609   :  { %10158 = vmatmul.mubr.msk.f32.vlgmr.msra.gmra.mrb[80].mxu0 %vm69_vm1, %v6546_v4 }
0x360a   :  { %10167 = vmatprep.mubr.msk.f32.mxu0 %vm10424_vm0, %v10425_v6 }
0x36dc   :  { %v6631_v34 = vpop.f32.mrb[80].mxu0 }
0x36dd   :  { %v6635_v35 = vadd.f32 %v6631_v34, %v10501_v26  ;;  %v10159_v36 = vpop.f32.mrb[81].mxu0 }
0x36df   :  { %v6636_v0 = vmul.f32 %v6635_v35, %v6635_v35 }
0x36e1   :  { %v6637_v20 = vsel %vm248_vm2, %v6636_v0, 0.0 }
0x36e2   :  { %6638 = vadd.xlane.f32.xlu1 %v6637_v20 }
0x376f   :  { %v6639_v49 = vpop.xlane.xlu1 %6638 }
0x3770   :  { %v6640_v37 = vrot.slane %v6639_v49, 4 }
0x3772   :  { %v6641_v38 = vadd.f32 %v6640_v37, %v6639_v49 }
0x3774   :  { %v6642_v39 = vrot.slane %v6641_v38, 2 }
0x3776   :  { %v6643_v40 = vadd.f32 %v6642_v39, %v6641_v38 }
0x3778   :  { %v6644_v41 = vrot.slane %v6643_v40, 1 }
0x377a   :  { %v6645_v50 = vadd.f32 %v6644_v41, %v6643_v40 }
0x377c   :  { %10385 = vpush %v6645_v50 }
0x37ad   :  { %s10386_s9 = spop %10385 }
0x37ae   :  { %v6647_v42 = vstv %s10386_s9 }
0x37af   :  { %10404 = vrsqrt.f32 %v6647_v42 }
0x37b9   :  { %v10405_v43 = vpop.eup %10404 }
0x37ba   :  { %10387 = vpush %v10405_v43 }
0x37eb   :  { %s10388_s10 = spop %10387 }
0x37ec   :  { %v6650_v44 = vstv %s10388_s10 }
0x37ed   :  { %10406 = vrsqrt.f32 %v6650_v44  ;;  %v6651_v45 = vmul.f32 %v6650_v44, %v6635_v35  ;;  %vm9233_vm8 = vcmp.eq.f32.partialorder %v6650_v44, inf  ;;  %v9236_v48 = vand.u32 2147483648, %v6650_v44 }
0x37ee   :  { %vm9235_vm9 = vcmp.eq.f32.partialorder %v6650_v44, 0.0 }
0x37ef   :  { %10161 = vmatpush3.msra.mxu1 %v6651_v45 }
0x37f0   :  { %10163 = vmatmul.mubr.msk.f32.vlgmr.msra.gmra.mrb[80].mxu1 %vm248_vm2, %v10501_v26  ;;  %10170 = vmatprep.subr.mxu1 %v10425_v6 }
0x37f1   :  { %10171 = vmatpush3.msk.msra.mxu1 %vm28_vm3, %v10426_v51  ;;  %10172 = vmatprep.mubr.msk.f32.mxu1 %vm10424_vm0, %v10425_v6 }
0x37f2   :  { %10180 = vmatprep.subr.mxu1 %v10425_v6 }
0x37f7   :  { %v10407_v46 = vpop.eup %10406 }
0x37f8   :  { %v9232_v47 = vmul.f32 %v10407_v46, %v6650_v44 }
0x37fa   :  { %v9234_v53 = vsel %vm9233_vm8, %v6650_v44, %v9232_v47 }
0x37fb   :  { %v9237_v54 = vsel %vm9235_vm9, %v9236_v48, %v9234_v53 }
0x37fc   :  { %10389 = vpush %v9237_v54 }
0x382d   :  { %s10908_s11 = spop %10389 }
0x382e   :  { %v9239_v26 = vstv %s10908_s11 }
0x382f   :  { %v10913_v24 = vmul.f32 %v9239_v26, %v9229_v31 }
0x38c3   :  { %v6718_v25 = vpop.f32.mrb[80].mxu1 }
0x38c4   :  { %v6722_v51 = vsub.f32 %v10524_v52, %v6718_v25  ;;  %v10164_v55 = vpop.f32.mrb[81].mxu1 }
0x38c6   :  { %v6723_v56 = vmul.f32 0.5, %v6722_v51 }
0x38c8   :  { %10166 = vmatpush3.msra.mxu0 %v6723_v56  ;;  %10173 = vmatmul.mubr.msk.f32.vlgmr.msra.gmra.mrb[82].mxu1 %vm248_vm2, %v6723_v56 }
0x38c9   :  { %10168 = vmatmul.mubr.msk.f32.vlgmr.msra.gmra.mrb[82].mxu0 %vm248_vm2, %v6651_v45  ;;  %10175 = vmatprep.subr.mxu0 %v10425_v6 }
0x38ca   :  { %10177 = vmatprep.mubr.msk.f32.mxu0 %vm10424_vm0, %v10425_v6  ;;  %10182 = vmatprep.mubr.msk.f32.mxu1 %vm10424_vm0, %v10425_v6 }
0x399b   :  { %v6866_v57 = vpop.f32.mrb[82].mxu1 }
0x399c   :  { %v6793_v58 = vpop.f32.mrb[82].mxu0  ;;  %v10174_v59 = vpop.f32.mrb[83].mxu1 }
0x399d   :  { %v10169_v61 = vpop.f32.mrb[83].mxu0  ;;  %10176 = vmatpush3.msra.mxu0 %v6793_v58 }
0x399e   :  { %10178 = vmatmul.mubr.msk.f32.vlgmr.msra.gmra.mrb[84].mxu0 %vm248_vm2, %v6866_v57  ;;  %10185 = vmatprep.subr.mxu0 %v10425_v6 }
0x399f   :  { %10186 = vmatpush3.msra.mxu0 %v6866_v57  ;;  %10187 = vmatprep.mubr.msk.f32.mxu0 %vm10424_vm0, %v10425_v6 }
0x39a0   :  { %10195 = vmatprep.subr.mxu0 %v10425_v6 }
0x3a71   :  { %v6939_v62 = vpop.f32.mrb[84].mxu0 }
0x3a72   :  { %v6943_v63 = vsub.f32 %v10524_v52, %v6939_v62  ;;  %v10179_v1 = vpop.f32.mrb[85].mxu0 }
0x3a74   :  { %v6944_v2 = vmul.f32 0.5, %v6943_v63 }
0x3a76   :  { %10181 = vmatpush3.msra.mxu1 %v6944_v2  ;;  %10188 = vmatmul.mubr.msk.f32.vlgmr.msra.gmra.mrb[86].mxu0 %vm248_vm2, %v6944_v2 }
0x3a77   :  { %10183 = vmatmul.mubr.msk.f32.vlgmr.msra.gmra.mrb[84].mxu1 %vm248_vm2, %v6793_v58  ;;  %10190 = vmatprep.subr.mxu1 %v10425_v6 }
0x3a78   :  { %10192 = vmatprep.mubr.msk.f32.mxu1 %vm10424_vm0, %v10425_v6  ;;  %10197 = vmatprep.mubr.msk.f32.mxu0 %vm10424_vm0, %v10425_v6 }
0x3b49   :  { %v7087_v3 = vpop.f32.mrb[86].mxu0 }
0x3b4a   :  { %v7014_v5 = vpop.f32.mrb[84].mxu1  ;;  %v10189_v7 = vpop.f32.mrb[87].mxu0 }
0x3b4b   :  { %v10184_v60 = vpop.f32.mrb[85].mxu1  ;;  %10191 = vmatpush3.msra.mxu1 %v7014_v5 }
0x3b4c   :  { %10193 = vmatmul.mubr.msk.f32.vlgmr.msra.gmra.mrb[86].mxu1 %vm248_vm2, %v7087_v3  ;;  %10200 = vmatprep.subr.mxu1 %v10425_v6 }
0x3b4d   :  { %10201 = vmatpush3.msra.mxu1 %v7087_v3  ;;  %10202 = vmatprep.mubr.msk.f32.mxu1 %vm10424_vm0, %v10425_v6 }
0x3b4e   :  { %10210 = vmatprep.subr.mxu1 %v10425_v6 }
0x3c1f   :  { %v7160_v23 = vpop.f32.mrb[86].mxu1 }
0x3c20   :  { %v7164_v8 = vsub.f32 %v10524_v52, %v7160_v23  ;;  %v10194_v9 = vpop.f32.mrb[87].mxu1 }
0x3c22   :  { %v7165_v10 = vmul.f32 0.5, %v7164_v8 }
0x3c24   :  { %10196 = vmatpush3.msra.mxu0 %v7165_v10  ;;  %10203 = vmatmul.mubr.msk.f32.vlgmr.msra.gmra.mrb[88].mxu1 %vm248_vm2, %v7165_v10 }
0x3c25   :  { %10198 = vmatmul.mubr.msk.f32.vlgmr.msra.gmra.mrb[88].mxu0 %vm248_vm2, %v7014_v5  ;;  %10205 = vmatprep.subr.mxu0 %v10425_v6 }
0x3c26   :  { %10207 = vmatprep.mubr.msk.f32.mxu0 %vm10424_vm0, %v10425_v6  ;;  %10212 = vmatprep.mubr.msk.f32.mxu1 %vm10424_vm0, %v10425_v6 }
0x3cf7   :  { %v7308_v11 = vpop.f32.mrb[88].mxu1 }
0x3cf8   :  { %v7235_v12 = vpop.f32.mrb[88].mxu0  ;;  %v10204_v27 = vpop.f32.mrb[89].mxu1 }
0x3cf9   :  { %v10199_v13 = vpop.f32.mrb[89].mxu0  ;;  %10206 = vmatpush3.msra.mxu0 %v7235_v12 }
0x3cfa   :  { %10208 = vmatmul.mubr.msk.f32.vlgmr.msra.gmra.mrb[90].mxu0 %vm248_vm2, %v7308_v11  ;;  %10215 = vmatprep.subr.mxu0 %v10425_v6 }
0x3cfb   :  { %10216 = vmatpush3.msra.mxu0 %v7308_v11  ;;  %10217 = vmatprep.mubr.msk.f32.mxu0 %vm10424_vm0, %v10425_v6 }
0x3cfc   :  { %10225 = vmatprep.subr.mxu0 %v10425_v6 }
0x3dcd   :  { %v7381_v14 = vpop.f32.mrb[90].mxu0 }
0x3dce   :  { %v7385_v15 = vsub.f32 %v10524_v52, %v7381_v14  ;;  %v10209_v16 = vpop.f32.mrb[91].mxu0 }
0x3dd0   :  { %v7386_v17 = vmul.f32 0.5, %v7385_v15 }
0x3dd2   :  { %10211 = vmatpush3.msra.mxu1 %v7386_v17  ;;  %10218 = vmatmul.mubr.msk.f32.vlgmr.msra.gmra.mrb[92].mxu0 %vm248_vm2, %v7386_v17 }
0x3dd3   :  { %10213 = vmatmul.mubr.msk.f32.vlgmr.msra.gmra.mrb[90].mxu1 %vm248_vm2, %v7235_v12  ;;  %10220 = vmatprep.subr.mxu1 %v10425_v6 }
0x3dd4   :  { %10222 = vmatprep.mubr.msk.f32.mxu1 %vm10424_vm0, %v10425_v6  ;;  %10227 = vmatprep.mubr.msk.f32.mxu0 %vm10424_vm0, %v10425_v6 }
0x3ea5   :  { %v7529_v18 = vpop.f32.mrb[92].mxu0 }
0x3ea6   :  { %v7456_v19 = vpop.f32.mrb[90].mxu1  ;;  %v10219_v21 = vpop.f32.mrb[93].mxu0 }
0x3ea7   :  { %v10214_v22 = vpop.f32.mrb[91].mxu1  ;;  %10221 = vmatpush3.msra.mxu1 %v7456_v19 }
0x3ea8   :  { %10223 = vmatmul.mubr.msk.f32.vlgmr.msra.gmra.mrb[92].mxu1 %vm248_vm2, %v7529_v18  ;;  %10230 = vmatprep.subr.mxu1 %v10425_v6 }
0x3ea9   :  { %10231 = vmatpush3.msra.mxu1 %v7529_v18  ;;  %10232 = vmatprep.mubr.msk.f32.mxu1 %vm10424_vm0, %v10425_v6  ;;  %v9240_v18 = vmul.f32 %v9239_v26, %v10890_v33 }
0x3eaa   :  { %10240 = vmatprep.subr.mxu1 %v10425_v6 }
0x3f7b   :  { %v7602_v28 = vpop.f32.mrb[92].mxu1 }
0x3f7c   :  { %v7606_v29 = vsub.f32 %v10524_v52, %v7602_v28  ;;  %v10224_v30 = vpop.f32.mrb[93].mxu1 }
0x3f7e   :  { %v7607_v31 = vmul.f32 0.5, %v7606_v29 }
0x3f80   :  { %10226 = vmatpush3.msra.mxu0 %v7607_v31  ;;  %10233 = vmatmul.mubr.msk.f32.vlgmr.msra.gmra.mrb[94].mxu1 %vm248_vm2, %v7607_v31 }
0x3f81   :  { %10228 = vmatmul.mubr.msk.f32.vlgmr.msra.gmra.mrb[94].mxu0 %vm248_vm2, %v7456_v19  ;;  %10235 = vmatprep.subr.mxu0 %v10425_v6 }
0x3f82   :  { %10237 = vmatprep.mubr.msk.f32.mxu0 %vm10424_vm0, %v10425_v6  ;;  %10242 = vmatprep.mubr.msk.f32.mxu1 %vm10424_vm0, %v10425_v6 }
0x4053   :  { %v7750_v32 = vpop.f32.mrb[94].mxu1 }
0x4054   :  { %v7677_v4 = vpop.f32.mrb[94].mxu0  ;;  %v10234_v34 = vpop.f32.mrb[95].mxu1 }
0x4055   :  { %v10229_v35 = vpop.f32.mrb[95].mxu0  ;;  %10236 = vmatpush3.msra.mxu0 %v7677_v4 }
0x4056   :  { %10238 = vmatmul.mubr.msk.f32.vlgmr.msra.gmra.mrb[96].mxu0 %vm248_vm2, %v7750_v32  ;;  %10245 = vmatprep.subr.mxu0 %v10425_v6 }
0x4057   :  { %10246 = vmatpush3.msra.mxu0 %v7750_v32  ;;  %10247 = vmatprep.mubr.msk.f32.mxu0 %vm10424_vm0, %v10425_v6 }
0x4058   :  { %10255 = vmatprep.subr.mxu0 %v10425_v6 }
0x4129   :  { %v7823_v36 = vpop.f32.mrb[96].mxu0 }
0x412a   :  { %v7827_v0 = vsub.f32 %v10524_v52, %v7823_v36  ;;  %v10239_v20 = vpop.f32.mrb[97].mxu0 }
0x412c   :  { %v7828_v49 = vmul.f32 0.5, %v7827_v0 }
0x412e   :  { %10241 = vmatpush3.msra.mxu1 %v7828_v49  ;;  %10248 = vmatmul.mubr.msk.f32.vlgmr.msra.gmra.mrb[98].mxu0 %vm248_vm2, %v7828_v49 }
0x412f   :  { %10243 = vmatmul.mubr.msk.f32.vlgmr.msra.gmra.mrb[96].mxu1 %vm248_vm2, %v7677_v4  ;;  %10250 = vmatprep.subr.mxu1 %v10425_v6 }
0x4130   :  { %10252 = vmatprep.mubr.msk.f32.mxu1 %vm10424_vm0, %v10425_v6  ;;  %10257 = vmatprep.mubr.msk.f32.mxu0 %vm10424_vm0, %v10425_v6 }
0x4201   :  { %v7971_v37 = vpop.f32.mrb[98].mxu0 }
0x4202   :  { %v7898_v38 = vpop.f32.mrb[96].mxu1  ;;  %v10249_v39 = vpop.f32.mrb[99].mxu0 }
0x4203   :  { %v10244_v40 = vpop.f32.mrb[97].mxu1  ;;  %10251 = vmatpush3.msra.mxu1 %v7898_v38 }
0x4204   :  { %10253 = vmatmul.mubr.msk.f32.vlgmr.msra.gmra.mrb[98].mxu1 %vm248_vm2, %v7971_v37  ;;  %10260 = vmatprep.subr.mxu1 %v10425_v6 }
0x4205   :  { %10261 = vmatpush3.msra.mxu1 %v7971_v37  ;;  %10262 = vmatprep.mubr.msk.f32.mxu1 %vm10424_vm0, %v10425_v6 }
0x4206   :  { %10270 = vmatprep.subr.mxu1 %v10425_v6 }
0x42d7   :  { %v8044_v41 = vpop.f32.mrb[98].mxu1 }
0x42d8   :  { %v8048_v50 = vsub.f32 %v10524_v52, %v8044_v41  ;;  %v10254_v42 = vpop.f32.mrb[99].mxu1 }
0x42da   :  { %v8049_v43 = vmul.f32 0.5, %v8048_v50 }
0x42dc   :  { %10256 = vmatpush3.msra.mxu0 %v8049_v43  ;;  %10263 = vmatmul.mubr.msk.f32.vlgmr.msra.gmra.mrb[100].mxu1 %vm248_vm2, %v8049_v43 }
0x42dd   :  { %10258 = vmatmul.mubr.msk.f32.vlgmr.msra.gmra.mrb[100].mxu0 %vm248_vm2, %v7898_v38  ;;  %10265 = vmatprep.subr.mxu0 %v10425_v6 }
0x42de   :  { %10267 = vmatprep.mubr.msk.f32.mxu0 %vm10424_vm0, %v10425_v6  ;;  %10272 = vmatprep.mubr.msk.f32.mxu1 %vm10424_vm0, %v10425_v6 }
0x43af   :  { %v8192_v44 = vpop.f32.mrb[100].mxu1 }
0x43b0   :  { %v8119_v45 = vpop.f32.mrb[100].mxu0  ;;  %v10264_v46 = vpop.f32.mrb[101].mxu1 }
0x43b1   :  { %v10259_v47 = vpop.f32.mrb[101].mxu0  ;;  %10266 = vmatpush3.msra.mxu0 %v8119_v45 }
0x43b2   :  { %10268 = vmatmul.mubr.msk.f32.vlgmr.msra.gmra.mrb[102].mxu0 %vm248_vm2, %v8192_v44  ;;  %10275 = vmatprep.subr.mxu0 %v10425_v6 }
0x43b3   :  { %10276 = vmatpush3.msra.mxu0 %v8192_v44  ;;  %10277 = vmatprep.mubr.msk.f32.mxu0 %vm10424_vm0, %v10425_v6 }
0x43b4   :  { %10285 = vmatprep.subr.mxu0 %v10425_v6 }
0x4485   :  { %v8265_v48 = vpop.f32.mrb[102].mxu0 }
0x4486   :  { %v8269_v53 = vsub.f32 %v10524_v52, %v8265_v48  ;;  %v10269_v54 = vpop.f32.mrb[103].mxu0 }
0x4488   :  { %v8270_v25 = vmul.f32 0.5, %v8269_v53 }
0x448a   :  { %10271 = vmatpush3.msra.mxu1 %v8270_v25  ;;  %10278 = vmatmul.mubr.msk.f32.vlgmr.msra.gmra.mrb[104].mxu0 %vm248_vm2, %v8270_v25 }
0x448b   :  { %10273 = vmatmul.mubr.msk.f32.vlgmr.msra.gmra.mrb[102].mxu1 %vm248_vm2, %v8119_v45  ;;  %10280 = vmatprep.subr.mxu1 %v10425_v6 }
0x448c   :  { %10282 = vmatprep.mubr.msk.f32.mxu1 %vm10424_vm0, %v10425_v6  ;;  %10287 = vmatprep.mubr.msk.f32.mxu0 %vm10424_vm0, %v10425_v6 }
0x455d   :  { %v8413_v51 = vpop.f32.mrb[104].mxu0 }
0x455e   :  { %v8340_v55 = vpop.f32.mrb[102].mxu1  ;;  %v10279_v56 = vpop.f32.mrb[105].mxu0 }
0x455f   :  { %v10274_v57 = vpop.f32.mrb[103].mxu1  ;;  %10281 = vmatpush3.msra.mxu1 %v8340_v55 }
0x4560   :  { %10283 = vmatmul.mubr.msk.f32.vlgmr.msra.gmra.mrb[104].mxu1 %vm248_vm2, %v8413_v51  ;;  %10290 = vmatprep.subr.mxu1 %v10425_v6 }
0x4561   :  { %10291 = vmatpush3.msra.mxu1 %v8413_v51  ;;  %10292 = vmatprep.mubr.msk.f32.mxu1 %vm10424_vm0, %v10425_v6 }
0x4562   :  { %10300 = vmatprep.subr.mxu1 %v10425_v6 }
0x4633   :  { %v8486_v58 = vpop.f32.mrb[104].mxu1 }
0x4634   :  { %v8490_v59 = vsub.f32 %v10524_v52, %v8486_v58  ;;  %v10284_v61 = vpop.f32.mrb[105].mxu1 }
0x4636   :  { %v8491_v62 = vmul.f32 0.5, %v8490_v59 }
0x4638   :  { %10286 = vmatpush3.msra.mxu0 %v8491_v62  ;;  %10293 = vmatmul.mubr.msk.f32.vlgmr.msra.gmra.mrb[106].mxu1 %vm248_vm2, %v8491_v62 }
0x4639   :  { %10288 = vmatmul.mubr.msk.f32.vlgmr.msra.gmra.mrb[106].mxu0 %vm248_vm2, %v8340_v55  ;;  %10295 = vmatprep.subr.mxu0 %v10425_v6 }
0x463a   :  { %10297 = vmatprep.mubr.msk.f32.mxu0 %vm10424_vm0, %v10425_v6  ;;  %10302 = vmatprep.mubr.msk.f32.mxu1 %vm10424_vm0, %v10425_v6 }
0x470b   :  { %v8634_v63 = vpop.f32.mrb[106].mxu1 }
0x470c   :  { %v8561_v1 = vpop.f32.mrb[106].mxu0  ;;  %v10294_v2 = vpop.f32.mrb[107].mxu1 }
0x470d   :  { %v10289_v3 = vpop.f32.mrb[107].mxu0  ;;  %10296 = vmatpush3.msra.mxu0 %v8561_v1 }
0x470e   :  { %10298 = vmatmul.mubr.msk.f32.vlgmr.msra.gmra.mrb[108].mxu0 %vm248_vm2, %v8634_v63  ;;  %10305 = vmatprep.subr.mxu0 %v10425_v6 }
0x470f   :  { %10306 = vmatpush3.msra.mxu0 %v8634_v63  ;;  %10307 = vmatprep.mubr.msk.f32.mxu0 %vm10424_vm0, %v10425_v6 }
0x4710   :  { %10315 = vmatprep.subr.mxu0 %v10425_v6 }
0x47e1   :  { %v8707_v5 = vpop.f32.mrb[108].mxu0 }
0x47e2   :  { %v8711_v7 = vsub.f32 %v10524_v52, %v8707_v5  ;;  %v10299_v60 = vpop.f32.mrb[109].mxu0 }
0x47e4   :  { %v8712_v23 = vmul.f32 0.5, %v8711_v7 }
0x47e6   :  { %10301 = vmatpush3.msra.mxu1 %v8712_v23  ;;  %10308 = vmatmul.mubr.msk.f32.vlgmr.msra.gmra.mrb[110].mxu0 %vm248_vm2, %v8712_v23 }
0x47e7   :  { %10303 = vmatmul.mubr.msk.f32.vlgmr.msra.gmra.mrb[108].mxu1 %vm248_vm2, %v8561_v1  ;;  %10310 = vmatprep.subr.mxu1 %v10425_v6 }
0x47e8   :  { %10312 = vmatprep.mubr.msk.f32.mxu1 %vm10424_vm0, %v10425_v6  ;;  %10317 = vmatprep.mubr.msk.f32.mxu0 %vm10424_vm0, %v10425_v6 }
0x48b9   :  { %v8855_v8 = vpop.f32.mrb[110].mxu0 }
0x48ba   :  { %v8782_v9 = vpop.f32.mrb[108].mxu1  ;;  %v10309_v10 = vpop.f32.mrb[111].mxu0 }
0x48bb   :  { %v10304_v11 = vpop.f32.mrb[109].mxu1  ;;  %10311 = vmatpush3.msra.mxu1 %v8782_v9 }
0x48bc   :  { %10313 = vmatmul.mubr.msk.f32.vlgmr.msra.gmra.mrb[110].mxu1 %vm248_vm2, %v8855_v8  ;;  %10320 = vmatprep.subr.mxu1 %v10425_v6 }
0x48bd   :  { %10321 = vmatpush3.msra.mxu1 %v8855_v8  ;;  %10322 = vmatprep.mubr.msk.f32.mxu1 %vm10424_vm0, %v10425_v6 }
0x48be   :  { %10330 = vmatprep.subr.mxu1 %v10425_v6 }
0x498f   :  { %v8928_v12 = vpop.f32.mrb[110].mxu1 }
0x4990   :  { %v8932_v27 = vsub.f32 %v10524_v52, %v8928_v12  ;;  %v10314_v13 = vpop.f32.mrb[111].mxu1 }
0x4992   :  { %v8933_v14 = vmul.f32 0.5, %v8932_v27 }
0x4994   :  { %10316 = vmatpush3.msra.mxu0 %v8933_v14  ;;  %10323 = vmatmul.mubr.msk.f32.vlgmr.msra.gmra.mrb[112].mxu1 %vm248_vm2, %v8933_v14 }
0x4995   :  { %10318 = vmatmul.mubr.msk.f32.vlgmr.msra.gmra.mrb[112].mxu0 %vm248_vm2, %v8782_v9  ;;  %10325 = vmatprep.subr.mxu0 %v10425_v6 }
0x4996   :  { %10327 = vmatprep.mubr.msk.f32.mxu0 %vm10424_vm0, %v10425_v6  ;;  %10332 = vmatprep.mubr.msk.f32.mxu1 %vm10424_vm0, %v10425_v6 }
0x4a67   :  { %v9076_v15 = vpop.f32.mrb[112].mxu1 }
0x4a68   :  { %v9003_v16 = vpop.f32.mrb[112].mxu0  ;;  %v10324_v17 = vpop.f32.mrb[113].mxu1  ;;  %10331 = vmatpush3.msra.mxu1 %v9076_v15 }
0x4a69   :  { %v10319_v19 = vpop.f32.mrb[113].mxu0  ;;  %10326 = vmatpush3.msra.mxu0 %v9003_v16 }
0x4a6a   :  { %10328 = vmatmul.mubr.msk.f32.vlgmr.msra.gmra.mrb[114].mxu0 %vm248_vm2, %v9076_v15 }
0x4a6b   :  { %10337 = vmatprep.mubr.msk.f32.mxu0 %vm248_vm2, %v9240_v18 }
0x4b3d   :  { %v9149_v21 = vpop.f32.mrb[114].mxu0 }
0x4b3e   :  { %v9153_v22 = vsub.f32 %v10524_v52, %v9149_v21  ;;  %v10329_v28 = vpop.f32.mrb[115].mxu0 }
0x4b40   :  { %v9154_v29 = vmul.f32 0.5, %v9153_v22 }
0x4b42   :  { %10333 = vmatmul.mubr.msk.f32.vlgmr.msra.gmra.mrb[114].mxu1 %vm248_vm2, %v9154_v29 }
0x4c15   :  { %v9224_v6 = vpop.f32.mrb[114].mxu1 }
0x4c16   :  { %v10334_v30 = vpop.f32.mrb[115].mxu1  ;;  %10335 = vmatprep.subr.mxu0 %v9224_v6 }
0x4c17   :  { %10336 = vmatpush3.msra.mxu0 %v9224_v6 }
0x4c18   :  { %10338 = vmatmul.mubr.msk.f32.vlgmr.msra.gmra.mrb[116].mxu0 %vm248_vm2, %v10913_v24 }
0x4ceb   :  { %v10339_v33 = vpop.f32.mrb[116].mxu0 }
0x4cec   :  { %9324 = vst.msk [vmem:[%s11072_s2 + $0x8] sm:$0xff] %vm248_vm2, %v10339_v33  ;;  %v9314_v26 = vpop.f32.mrb[117].mxu0 }
0x4ced   :  { %9323 = vst.msk [vmem:[%s11072_s2] sm:$0xff] %vm248_vm2, %v9314_v26 }
0x4cee   :  { %9329 = vsyncpa [#allocation3], 1 }

</bundles_post_ra>
